<compile_context>
chip_gen: v7x
topology: tpu7x:2x2x1
jax: 0.10.0
libtpu: 0.0.40
codegen_flags: <defaults>
</compile_context>

<pallas_src>
import jax
import jax.numpy as jnp
from jax import lax
from jax.experimental import pallas as pl
from jax.experimental.pallas import tpu as pltpu


# --------------------------- in-kernel fused bi-GRU ----------------------------

def _bigru_hidden_states(ids, msk, emb_wih, bgi, whh, bhn, S, B, H, V):
    """Fused embedding-gather + input projection + combined bi-directional GRU.

    ids / msk : (S*B, 2)  row r = s*B + b holds [token(b, s), token(b, S-1-s)]
    emb_wih   : (2V, 6H)  blockdiag(emb, emb) @ Wih_comb, gate cols [rf|rb|zf|zb|nf|nb]
    bgi       : (1, 6H)   b_ih with b_hr / b_hz folded in (b_hn kept separate)
    whh       : (2H, 6H)  block-diagonal recurrent weights (same gate column order)
    bhn       : (1, 2H)   [b_hn_fwd | b_hn_bwd]
    Returns   : list of S values hs_list[t] = (B, 2H) = [h_fwd(t) | h_bwd(t)].
    """
    R = S * B
    H2, H4 = 2 * H, 4 * H

    # Masked one-hot rows (mask folded in: (x*m) @ W == m * (x @ W)).
    iota_v = lax.broadcasted_iota(jnp.int32, (R, V), 1)
    oh_f = (ids[:, 0:1] == iota_v).astype(jnp.float32) * msk[:, 0:1]     # (R, V)
    oh_b = (ids[:, 1:2] == iota_v).astype(jnp.float32) * msk[:, 1:2]     # (R, V)
    oh = jnp.concatenate([oh_f, oh_b], axis=-1)                          # (R, 2V)

    # Gather + hoisted input projection for all steps/gates/directions: one matmul.
    gi = jnp.dot(oh, emb_wih, preferred_element_type=jnp.float32) + bgi  # (R, 6H)

    h = jnp.zeros((B, H2), jnp.float32)                                  # [h_f | h_b]
    steps = []
    for s in range(S):                                                   # unrolled
        g = gi[s * B:(s + 1) * B, :]                                     # (B, 6H)
        if s == 0:                                                       # h == 0
            pre_rz = g[:, :H4]
            gh_n = bhn
        else:
            # ONE MXU dot per step for both directions and all three gates.
            gh = jnp.dot(h, whh, preferred_element_type=jnp.float32)     # (B, 6H)
            pre_rz = g[:, :H4] + gh[:, :H4]
            gh_n = gh[:, H4:] + bhn
        rz = jax.nn.sigmoid(pre_rz)                                      # (B, 4H): 1 EUP call
        r, z = rz[:, :H2], rz[:, H2:]
        n = jnp.tanh(g[:, H4:] + r * gh_n)
        h = (1.0 - z) * n + z * h
        steps.append(h)                                                  # (B, 2H)

    # steps[s] = [h_fwd(t=s) | h_bwd(t=S-1-s)] -> re-pair to time-aligned states.
    return [jnp.concatenate([steps[t][:, :H], steps[S - 1 - t][:, H:]], axis=-1)
            for t in range(S)]


# ------------------------------- fused kernels ---------------------------------

def _make_all_kernel(S, B, H, V):
    def kernel(ids_ref, msk_ref, emb_wih_ref, bgi_ref, whh_ref, bhn_ref,
               w1t_ref, b1c_ref, w3_ref, out_ref):
        hs_list = _bigru_hidden_states(
            ids_ref[...], msk_ref[...], emb_wih_ref[...], bgi_ref[...],
            whh_ref[...], bhn_ref[...], S, B, H, V)
        hs2 = jnp.concatenate(hs_list, axis=0)                           # (S*B, 2H)
        # b1c already contains b1 + h_forward @ W2^T (pre-folded at pack time).
        m = jnp.tanh(jnp.dot(hs2, w1t_ref[...],
                             preferred_element_type=jnp.float32) + b1c_ref[...])
        w3 = w3_ref[...]                                                 # (1, H)
        # Scores laid out (B, S) on lanes: VPU multiply + lane reduce, no N=1 matmul.
        sc = jnp.concatenate(
            [jnp.sum(m[t * B:(t + 1) * B, :] * w3, axis=-1, keepdims=True)
             for t in range(S)], axis=-1)                                # (B, S)
        sc = sc - jnp.max(sc, axis=-1, keepdims=True)
        e = jnp.exp(sc)
        alpha = e * pl.reciprocal(jnp.sum(e, axis=-1, keepdims=True), approx=False)
        # Emit the final (B, S*2H) layout directly (no wrapper reshape/transpose).
        out_ref[...] = jnp.concatenate(
            [hs_list[t] * alpha[:, t:t + 1] for t in range(S)], axis=-1)
    return kernel


def _make_lmrnn_kernel(S, B, H, V):
    def kernel(ids_ref, msk_ref, emb_wih_ref, bgi_ref, whh_ref, bhn_ref,
               fc2p_ref, out_ref):
        hs_list = _bigru_hidden_states(
            ids_ref[...], msk_ref[...], emb_wih_ref[...], bgi_ref[...],
            whh_ref[...], bhn_ref[...], S, B, H, V)
        hs2 = jnp.concatenate(hs_list, axis=0)                           # (S*B, 2H)
        y = jnp.dot(hs2, fc2p_ref[...],
                    preferred_element_type=jnp.float32)                  # (S*B, 128)
        # (B, S*128): per-t pieces are 128-lane aligned -> pure vreg placement.
        out_ref[...] = jnp.concatenate(
            [y[t * B:(t + 1) * B, :] for t in range(S)], axis=-1)
    return kernel


def _make_onlylm_kernel(V):
    def kernel(ids_ref, msk_ref, emb_fc1p_ref, out_ref):
        R = ids_ref.shape[0]
        iota_v = lax.broadcasted_iota(jnp.int32, (R, V), 1)
        oh = (ids_ref[...] == iota_v).astype(jnp.float32) * msk_ref[...]  # (R, V)
        # Gather + fc1 fused: one (R, V) x (V, 128) matmul (emb @ fc1^T pre-packed).
        out_ref[...] = jnp.dot(oh, emb_fc1p_ref[...],
                               preferred_element_type=jnp.float32)
    return kernel


# ---------------------------------- wrappers -----------------------------------

def _full_specs(args):
    return [pl.BlockSpec(tuple(a.shape), lambda i, n=a.ndim: (0,) * n) for a in args]


def dac_all_pallas(ids_comb, msk_comb, pk, S, B, H):
    V = pk['emb_wih'].shape[0] // 2
    args = (ids_comb, msk_comb, pk['emb_wih'], pk['bgi'], pk['whh'], pk['bhn'],
            pk['w1_t'], pk['b1c'], pk['w3'])
    return pl.pallas_call(
        _make_all_kernel(S, B, H, V),
        grid=(1,),
        in_specs=_full_specs(args),
        out_specs=pl.BlockSpec((B, S * 2 * H), lambda i: (0, 0)),
        out_shape=jax.ShapeDtypeStruct((B, S * 2 * H), jnp.float32),
        compiler_params=pltpu.CompilerParams(dimension_semantics=("arbitrary",)),
    )(*args)


def dac_lmrnn_pallas(ids_comb, msk_comb, pk, S, B, H):
    V = pk['emb_wih'].shape[0] // 2
    opad = pk['fc2p_t'].shape[1]
    args = (ids_comb, msk_comb, pk['emb_wih'], pk['bgi'], pk['whh'], pk['bhn'],
            pk['fc2p_t'])
    return pl.pallas_call(
        _make_lmrnn_kernel(S, B, H, V),
        grid=(1,),
        in_specs=_full_specs(args),
        out_specs=pl.BlockSpec((B, S * opad), lambda i: (0, 0)),
        out_shape=jax.ShapeDtypeStruct((B, S * opad), jnp.float32),
        compiler_params=pltpu.CompilerParams(dimension_semantics=("arbitrary",)),
    )(*args)


def onlylm_pallas(ids_flat, msk_flat, emb_fc1p):
    R = ids_flat.shape[0]
    V, opad = emb_fc1p.shape
    args = (ids_flat, msk_flat, emb_fc1p)
    return pl.pallas_call(
        _make_onlylm_kernel(V),
        grid=(1,),
        in_specs=_full_specs(args),
        out_specs=pl.BlockSpec((R, opad), lambda i: (0, 0)),
        out_shape=jax.ShapeDtypeStruct((R, opad), jnp.float32),
        compiler_params=pltpu.CompilerParams(dimension_semantics=("arbitrary",)),
    )(*args)


# --------------------------------- module port ----------------------------------

class ContextAwareDACPallas:
    """JAX/Pallas port of ContextAwareDAC.forward."""

    def __init__(self, mode='all', hidden_size=32, output_size=100, vocab_size=64,
                 key=jax.random.PRNGKey(0)):
        self.mode = mode
        self.hidden_size = hidden_size
        self.output_size = output_size
        self.vocab_size = vocab_size
        H = hidden_size
        ks = jax.random.split(key, 16)
        norm = lambda k, shape: jax.random.normal(k, shape, jnp.float32) * 0.1
        self.params = {
            # TODO(synk): the RoBERTa encoder inside UtteranceRNN has no clean Pallas
            # equivalent; it is replaced by a deterministic embedding lookup producing
            # the (B, S, hidden) language-model features that feed the bi-GRU.
            'emb': norm(ks[0], (vocab_size, H)),
            'gru_f_wih': norm(ks[1], (3 * H, H)), 'gru_f_whh': norm(ks[2], (3 * H, H)),
            'gru_f_bih': norm(ks[3], (3 * H,)),   'gru_f_bhh': norm(ks[4], (3 * H,)),
            'gru_b_wih': norm(ks[5], (3 * H, H)), 'gru_b_whh': norm(ks[6], (3 * H, H)),
            'gru_b_bih': norm(ks[7], (3 * H,)),   'gru_b_bhh': norm(ks[8], (3 * H,)),
            # ContextAwareAttention(hidden_size=2H, output_size=H)
            'caa_w1': norm(ks[9], (H, 2 * H)), 'caa_b1': norm(ks[10], (H,)),
            'caa_w2': norm(ks[11], (H, H)),    'caa_w3': norm(ks[12], (1, H)),
            # fc1: hidden->100 (768->100 in original), fc2: 2*hidden->100, bias-free
            'fc1': norm(ks[13], (output_size, H)),
            'fc2': norm(ks[14], (output_size, 2 * H)),
        }
        # self.hx = torch.randn((2, 1, hidden_size))
        self.hx = jax.random.normal(ks[15], (2, 1, H), jnp.float32)
        # NOTE: self.classifier is built in __init__ but never used in forward -> omitted.
        self._packed = self._pack_params()          # pre-transposed / fused weights

    def _pack_params(self):
        p, H, V = self.params, self.hidden_size, self.vocab_size
        f32 = jnp.float32
        emb = p['emb']

        def gate_rows(w):                            # (3H, X) -> three (H, X)
            return w[:H], w[H:2 * H], w[2 * H:]

        Wf_r, Wf_z, Wf_n = gate_rows(p['gru_f_wih'])
        Wb_r, Wb_z, Wb_n = gate_rows(p['gru_b_wih'])
        Uf_r, Uf_z, Uf_n = gate_rows(p['gru_f_whh'])
        Ub_r, Ub_z, Ub_n = gate_rows(p['gru_b_whh'])
        bif, bhf = p['gru_f_bih'], p['gru_f_bhh']
        bib, bhb = p['gru_b_bih'], p['gru_b_bhh']
        bif_r, bif_z, bif_n = bif[:H], bif[H:2 * H], bif[2 * H:]
        bhf_r, bhf_z, bhf_n = bhf[:H], bhf[H:2 * H], bhf[2 * H:]
        bib_r, bib_z, bib_n = bib[:H], bib[H:2 * H], bib[2 * H:]
        bhb_r, bhb_z, bhb_n = bhb[:H], bhb[H:2 * H], bhb[2 * H:]

        zV = jnp.zeros((V, H), f32)
        zH = jnp.zeros((H, H), f32)
        # Gate column order (6H): [r_fwd | r_bwd | z_fwd | z_bwd | n_fwd | n_bwd]
        # so the r/z block is exactly 4H = 128 lanes and the n block starts at 128.
        emb_wih = jnp.concatenate([
            jnp.concatenate([emb @ Wf_r.T, zV, emb @ Wf_z.T, zV, emb @ Wf_n.T, zV], axis=1),
            jnp.concatenate([zV, emb @ Wb_r.T, zV, emb @ Wb_z.T, zV, emb @ Wb_n.T], axis=1),
        ], axis=0)                                                        # (2V, 6H)
        whh = jnp.concatenate([
            jnp.concatenate([Uf_r.T, zH, Uf_z.T, zH, Uf_n.T, zH], axis=1),
            jnp.concatenate([zH, Ub_r.T, zH, Ub_z.T, zH, Ub_n.T], axis=1),
        ], axis=0)                                                        # (2H, 6H)
        # b_ih with b_hr/b_hz folded (b_hn stays separate: it sits inside r*(...)).
        bgi = jnp.concatenate([bif_r + bhf_r, bib_r + bhb_r,
                               bif_z + bhf_z, bib_z + bhb_z,
                               bif_n, bib_n])[None, :]                    # (1, 6H)
        bhn = jnp.concatenate([bhf_n, bhb_n])[None, :]                    # (1, 2H)

        opad = ((self.output_size + 127) // 128) * 128                    # lane-dense heads
        fc2p_t = jnp.zeros((2 * H, opad), f32).at[:, :self.output_size].set(p['fc2'].T)
        emb_fc1p = jnp.zeros((V, opad), f32).at[:, :self.output_size].set(emb @ p['fc1'].T)

        return {
            'emb_wih': emb_wih, 'bgi': bgi, 'whh': whh, 'bhn': bhn,
            'w1_t': p['caa_w1'].T,
            # batch-invariant context term folded into the bias once, at pack time
            'b1c': p['caa_b1'][None, :] + self.hx[0] @ p['caa_w2'].T,     # (1, H)
            'w3': p['caa_w3'],
            'fc2p_t': fc2p_t, 'emb_fc1p': emb_fc1p,
        }

    def __call__(self, input_ids, attention_mask):
        B, S = input_ids.shape
        H = self.hidden_size
        pk = self._packed
        ids = input_ids.astype(jnp.int32)
        mask = attention_mask.astype(jnp.float32)

        if self.mode == 'onlylm':
            y = onlylm_pallas(ids.reshape(B * S, 1), mask.reshape(B * S, 1),
                              pk['emb_fc1p'])                             # (B*S, 128)
            return y[:, :self.output_size].reshape(B, -1)

        # Row r = s*B + b carries [token(b, s), token(b, S-1-s)] so one combined
        # recurrence step serves both GRU directions (time reversal in the layout).
        ids_t, msk_t = ids.T, mask.T                                      # (S, B)
        ids_comb = jnp.stack([ids_t.reshape(-1), ids_t[::-1].reshape(-1)], axis=1)
        msk_comb = jnp.stack([msk_t.reshape(-1), msk_t[::-1].reshape(-1)], axis=1)

        if self.mode == 'lmrnn':
            y = dac_lmrnn_pallas(ids_comb, msk_comb, pk, S, B, H)         # (B, S*128)
            return y.reshape(B, S, -1)[:, :, :self.output_size].reshape(B, -1)
        else:
            return dac_all_pallas(ids_comb, msk_comb, pk, S, B, H)        # (B, S*2H)


# -------------------------- pure-JAX reference (check) ---------------------------

def reference_forward(model, input_ids, attention_mask):
    p, H = model.params, model.hidden_size
    x = jnp.take(p['emb'], input_ids, axis=0) * attention_mask[..., None].astype(jnp.float32)
    B = x.shape[0]
    if model.mode == 'onlylm':
        return (x @ p['fc1'].T).reshape(B, -1)

    x_sbh = jnp.transpose(x, (1, 0, 2))

    def run_dir(wih, whh, bih, bhh, reverse):
        xs = x_sbh[::-1] if reverse else x_sbh

        def step(h, x_t):
            gi = x_t @ wih.T + bih
            gh = h @ whh.T + bhh
            r = jax.nn.sigmoid(gi[:, :H] + gh[:, :H])
            z = jax.nn.sigmoid(gi[:, H:2 * H] + gh[:, H:2 * H])
            n = jnp.tanh(gi[:, 2 * H:] + r * gh[:, 2 * H:])
            h_new = (1.0 - z) * n + z * h
            return h_new, h_new

        _, ys = lax.scan(step, jnp.zeros((B, H), jnp.float32), xs)
        return ys[::-1] if reverse else ys

    out_f = run_dir(p['gru_f_wih'], p['gru_f_whh'], p['gru_f_bih'], p['gru_f_bhh'], False)
    out_b = run_dir(p['gru_b_wih'], p['gru_b_whh'], p['gru_b_bih'], p['gru_b_bhh'], True)
    hs = jnp.transpose(jnp.concatenate([out_f, out_b], axis=-1), (1, 0, 2))    # (B,S,2H)

    if model.mode == 'lmrnn':
        return (hs @ p['fc2'].T).reshape(B, -1)

    h_forward = model.hx[0]
    m = jnp.tanh(hs @ p['caa_w1'].T + p['caa_b1'] + h_forward @ p['caa_w2'].T)
    alpha = jax.nn.softmax(m @ p['caa_w3'].T, axis=1)                          # (B,S,1)
    return (hs * alpha).reshape(B, -1)


# ------------------------------------ main ---------------------------------------

if __name__ == "__main__":
    key = jax.random.PRNGKey(0)
    k_ids, k_model = jax.random.split(key)
    B, S, H, V = 2, 8, 32, 64

    input_ids = jax.random.randint(k_ids, (B, S), 0, V, dtype=jnp.int32)
    attention_mask = jnp.array([[1] * S, [1] * (S - 3) + [0] * 3], dtype=jnp.int32)

    model = ContextAwareDACPallas(mode='all', hidden_size=H, output_size=100,
                                  vocab_size=V, key=k_model)

    # mode='all' (default forward path)
    out = jax.block_until_ready(model(input_ids, attention_mask))
    assert out.shape == (B, S * 2 * H), out.shape
    ref = reference_forward(model, input_ids, attention_mask)
    err = float(jnp.max(jnp.abs(out - ref)))
    assert jnp.allclose(out, ref, rtol=1e-4, atol=1e-4), f"mode=all max_err={err}"

    # secondary modes (same params, different tails)
    for mode in ('lmrnn', 'onlylm'):
        model.mode = mode
        o = jax.block_until_ready(model(input_ids, attention_mask))
        assert o.shape == (B, S * 100), (mode, o.shape)
        r = reference_forward(model, input_ids, attention_mask)
        e = float(jnp.max(jnp.abs(o - r)))
        assert jnp.allclose(o, r, rtol=1e-4, atol=1e-4), f"mode={mode} max_err={e}"

    print("KERNEL_OK")
</pallas_src>

<mosaic_0001>
module attributes {stable_mosaic.version = 11 : i64} {
  func.func @kernel(%arg0: i32, %arg1: memref<16x2xi32, #tpu.memory_space<vmem>>, %arg2: memref<16x2xf32, #tpu.memory_space<vmem>>, %arg3: memref<128x192xf32, #tpu.memory_space<vmem>>, %arg4: memref<1x192xf32, #tpu.memory_space<vmem>>, %arg5: memref<64x192xf32, #tpu.memory_space<vmem>>, %arg6: memref<1x64xf32, #tpu.memory_space<vmem>>, %arg7: memref<64x32xf32, #tpu.memory_space<vmem>>, %arg8: memref<1x32xf32, #tpu.memory_space<vmem>>, %arg9: memref<1x32xf32, #tpu.memory_space<vmem>>, %arg10: memref<2x512xf32, #tpu.memory_space<vmem>>) attributes {dimension_semantics = [#tpu.dimension_semantics<arbitrary>], iteration_bounds = array<i64: 1>, scalar_prefetch = 0 : i64, scratch_operands = 0 : i64, tpu.core_type = #tpu.core_type<tc>, window_params = [{pipeline_mode = #tpu.pipeline_mode<synchronous>, transform_indices = @transform_0, window_bounds = array<i64: 16, 2>}, {pipeline_mode = #tpu.pipeline_mode<synchronous>, transform_indices = @transform_1, window_bounds = array<i64: 16, 2>}, {pipeline_mode = #tpu.pipeline_mode<synchronous>, transform_indices = @transform_2, window_bounds = array<i64: 128, 192>}, {pipeline_mode = #tpu.pipeline_mode<synchronous>, transform_indices = @transform_3, window_bounds = array<i64: 1, 192>}, {pipeline_mode = #tpu.pipeline_mode<synchronous>, transform_indices = @transform_4, window_bounds = array<i64: 64, 192>}, {pipeline_mode = #tpu.pipeline_mode<synchronous>, transform_indices = @transform_5, window_bounds = array<i64: 1, 64>}, {pipeline_mode = #tpu.pipeline_mode<synchronous>, transform_indices = @transform_6, window_bounds = array<i64: 64, 32>}, {pipeline_mode = #tpu.pipeline_mode<synchronous>, transform_indices = @transform_7, window_bounds = array<i64: 1, 32>}, {pipeline_mode = #tpu.pipeline_mode<synchronous>, transform_indices = @transform_8, window_bounds = array<i64: 1, 32>}, {pipeline_mode = #tpu.pipeline_mode<synchronous>, transform_indices = @transform_9, window_bounds = array<i64: 2, 512>}]} {
    %c0 = arith.constant 0 : index
    %c0_0 = arith.constant 0 : index
    %0 = vector.load %arg1[%c0, %c0_0] : memref<16x2xi32, #tpu.memory_space<vmem>>, vector<16x2xi32>
    %c0_1 = arith.constant 0 : index
    %c0_2 = arith.constant 0 : index
    %1 = vector.load %arg2[%c0_1, %c0_2] : memref<16x2xf32, #tpu.memory_space<vmem>>, vector<16x2xf32>
    %c0_3 = arith.constant 0 : index
    %c0_4 = arith.constant 0 : index
    %2 = vector.load %arg3[%c0_3, %c0_4] : memref<128x192xf32, #tpu.memory_space<vmem>>, vector<128x192xf32>
    %c0_5 = arith.constant 0 : index
    %c0_6 = arith.constant 0 : index
    %3 = vector.load %arg4[%c0_5, %c0_6] : memref<1x192xf32, #tpu.memory_space<vmem>>, vector<1x192xf32>
    %c0_7 = arith.constant 0 : index
    %c0_8 = arith.constant 0 : index
    %4 = vector.load %arg5[%c0_7, %c0_8] : memref<64x192xf32, #tpu.memory_space<vmem>>, vector<64x192xf32>
    %c0_9 = arith.constant 0 : index
    %c0_10 = arith.constant 0 : index
    %5 = vector.load %arg6[%c0_9, %c0_10] : memref<1x64xf32, #tpu.memory_space<vmem>>, vector<1x64xf32>
    %6 = tpu.iota {dimensions = array<i32: 1>} : vector<16x64xi32>
    %7 = vector.extract_strided_slice %0 {offsets = [0, 0], sizes = [16, 1], strides = [1, 1]} : vector<16x2xi32> to vector<16x1xi32>
    %8 = vector.broadcast %7 : vector<16x1xi32> to vector<16x64xi32>
    %9 = arith.cmpi eq, %8, %6 : vector<16x64xi32>
    %10 = arith.extui %9 : vector<16x64xi1> to vector<16x64xi32>
    %11 = arith.sitofp %10 : vector<16x64xi32> to vector<16x64xf32>
    %12 = vector.extract_strided_slice %1 {offsets = [0, 0], sizes = [16, 1], strides = [1, 1]} : vector<16x2xf32> to vector<16x1xf32>
    %13 = vector.broadcast %12 : vector<16x1xf32> to vector<16x64xf32>
    %14 = arith.mulf %11, %13 : vector<16x64xf32>
    %15 = vector.extract_strided_slice %0 {offsets = [0, 1], sizes = [16, 1], strides = [1, 1]} : vector<16x2xi32> to vector<16x1xi32>
    %16 = vector.broadcast %15 : vector<16x1xi32> to vector<16x64xi32>
    %17 = arith.cmpi eq, %16, %6 : vector<16x64xi32>
    %18 = arith.extui %17 : vector<16x64xi1> to vector<16x64xi32>
    %19 = arith.sitofp %18 : vector<16x64xi32> to vector<16x64xf32>
    %20 = vector.extract_strided_slice %1 {offsets = [0, 1], sizes = [16, 1], strides = [1, 1]} : vector<16x2xf32> to vector<16x1xf32>
    %21 = vector.broadcast %20 : vector<16x1xf32> to vector<16x64xf32>
    %22 = arith.mulf %19, %21 : vector<16x64xf32>
    %23 = tpu.concatenate %14, %22 in 1 : vector<16x64xf32>, vector<16x64xf32> -> vector<16x128xf32>
    %cst = arith.constant dense<0.000000e+00> : vector<16x192xf32>
    %24 = tpu.matmul %23, %2, %cst {dimension_numbers = #tpu.dot_dimension_numbers<[1], [0], [0], [1], [0, 0, 1, 1], [], []>} : vector<16x128xf32>, vector<128x192xf32>, vector<16x192xf32> -> vector<16x192xf32>
    %25 = vector.broadcast %3 : vector<1x192xf32> to vector<16x192xf32>
    %26 = arith.addf %24, %25 : vector<16x192xf32>
    %cst_11 = arith.constant 0.000000e+00 : f32
    %27 = vector.broadcast %cst_11 : f32 to vector<2x64xf32>
    %28 = vector.extract_strided_slice %26 {offsets = [0, 0], sizes = [2, 192], strides = [1, 1]} : vector<16x192xf32> to vector<2x192xf32>
    %29 = vector.extract_strided_slice %28 {offsets = [0, 0], sizes = [2, 128], strides = [1, 1]} : vector<2x192xf32> to vector<2x128xf32>
    %30 = arith.negf %29 : vector<2x128xf32>
    %31 = math.exp %30 : vector<2x128xf32>
    %cst_12 = arith.constant 1.000000e+00 : f32
    %32 = vector.broadcast %cst_12 : f32 to vector<2x128xf32>
    %33 = arith.addf %32, %31 : vector<2x128xf32>
    %34 = arith.divf %32, %33 : vector<2x128xf32>
    %35 = vector.extract_strided_slice %34 {offsets = [0, 0], sizes = [2, 64], strides = [1, 1]} : vector<2x128xf32> to vector<2x64xf32>
    %36 = vector.extract_strided_slice %34 {offsets = [0, 64], sizes = [2, 64], strides = [1, 1]} : vector<2x128xf32> to vector<2x64xf32>
    %37 = vector.extract_strided_slice %28 {offsets = [0, 128], sizes = [2, 64], strides = [1, 1]} : vector<2x192xf32> to vector<2x64xf32>
    %38 = vector.broadcast %5 : vector<1x64xf32> to vector<2x64xf32>
    %39 = arith.mulf %35, %38 : vector<2x64xf32>
    %40 = arith.addf %37, %39 : vector<2x64xf32>
    %41 = math.tanh %40 : vector<2x64xf32>
    %cst_13 = arith.constant 1.000000e+00 : f32
    %42 = vector.broadcast %cst_13 : f32 to vector<2x64xf32>
    %43 = arith.subf %42, %36 : vector<2x64xf32>
    %44 = arith.mulf %43, %41 : vector<2x64xf32>
    %45 = arith.mulf %36, %27 : vector<2x64xf32>
    %46 = arith.addf %44, %45 : vector<2x64xf32>
    %47 = vector.extract_strided_slice %26 {offsets = [2, 0], sizes = [2, 192], strides = [1, 1]} : vector<16x192xf32> to vector<2x192xf32>
    %cst_14 = arith.constant dense<0.000000e+00> : vector<2x192xf32>
    %48 = tpu.matmul %46, %4, %cst_14 {dimension_numbers = #tpu.dot_dimension_numbers<[1], [0], [0], [1], [0, 0, 1, 1], [], []>} : vector<2x64xf32>, vector<64x192xf32>, vector<2x192xf32> -> vector<2x192xf32>
    %49 = vector.extract_strided_slice %47 {offsets = [0, 0], sizes = [2, 128], strides = [1, 1]} : vector<2x192xf32> to vector<2x128xf32>
    %50 = vector.extract_strided_slice %48 {offsets = [0, 0], sizes = [2, 128], strides = [1, 1]} : vector<2x192xf32> to vector<2x128xf32>
    %51 = arith.addf %49, %50 : vector<2x128xf32>
    %52 = vector.extract_strided_slice %48 {offsets = [0, 128], sizes = [2, 64], strides = [1, 1]} : vector<2x192xf32> to vector<2x64xf32>
    %53 = vector.broadcast %5 : vector<1x64xf32> to vector<2x64xf32>
    %54 = arith.addf %52, %53 : vector<2x64xf32>
    %55 = arith.negf %51 : vector<2x128xf32>
    %56 = math.exp %55 : vector<2x128xf32>
    %cst_15 = arith.constant 1.000000e+00 : f32
    %57 = vector.broadcast %cst_15 : f32 to vector<2x128xf32>
    %58 = arith.addf %57, %56 : vector<2x128xf32>
    %59 = arith.divf %57, %58 : vector<2x128xf32>
    %60 = vector.extract_strided_slice %59 {offsets = [0, 0], sizes = [2, 64], strides = [1, 1]} : vector<2x128xf32> to vector<2x64xf32>
    %61 = vector.extract_strided_slice %59 {offsets = [0, 64], sizes = [2, 64], strides = [1, 1]} : vector<2x128xf32> to vector<2x64xf32>
    %62 = vector.extract_strided_slice %47 {offsets = [0, 128], sizes = [2, 64], strides = [1, 1]} : vector<2x192xf32> to vector<2x64xf32>
    %63 = arith.mulf %60, %54 : vector<2x64xf32>
    %64 = arith.addf %62, %63 : vector<2x64xf32>
    %65 = math.tanh %64 : vector<2x64xf32>
    %cst_16 = arith.constant 1.000000e+00 : f32
    %66 = vector.broadcast %cst_16 : f32 to vector<2x64xf32>
    %67 = arith.subf %66, %61 : vector<2x64xf32>
    %68 = arith.mulf %67, %65 : vector<2x64xf32>
    %69 = arith.mulf %61, %46 : vector<2x64xf32>
    %70 = arith.addf %68, %69 : vector<2x64xf32>
    %71 = vector.extract_strided_slice %26 {offsets = [4, 0], sizes = [2, 192], strides = [1, 1]} : vector<16x192xf32> to vector<2x192xf32>
    %cst_17 = arith.constant dense<0.000000e+00> : vector<2x192xf32>
    %72 = tpu.matmul %70, %4, %cst_17 {dimension_numbers = #tpu.dot_dimension_numbers<[1], [0], [0], [1], [0, 0, 1, 1], [], []>} : vector<2x64xf32>, vector<64x192xf32>, vector<2x192xf32> -> vector<2x192xf32>
    %73 = vector.extract_strided_slice %71 {offsets = [0, 0], sizes = [2, 128], strides = [1, 1]} : vector<2x192xf32> to vector<2x128xf32>
    %74 = vector.extract_strided_slice %72 {offsets = [0, 0], sizes = [2, 128], strides = [1, 1]} : vector<2x192xf32> to vector<2x128xf32>
    %75 = arith.addf %73, %74 : vector<2x128xf32>
    %76 = vector.extract_strided_slice %72 {offsets = [0, 128], sizes = [2, 64], strides = [1, 1]} : vector<2x192xf32> to vector<2x64xf32>
    %77 = vector.broadcast %5 : vector<1x64xf32> to vector<2x64xf32>
    %78 = arith.addf %76, %77 : vector<2x64xf32>
    %79 = arith.negf %75 : vector<2x128xf32>
    %80 = math.exp %79 : vector<2x128xf32>
    %cst_18 = arith.constant 1.000000e+00 : f32
    %81 = vector.broadcast %cst_18 : f32 to vector<2x128xf32>
    %82 = arith.addf %81, %80 : vector<2x128xf32>
    %83 = arith.divf %81, %82 : vector<2x128xf32>
    %84 = vector.extract_strided_slice %83 {offsets = [0, 0], sizes = [2, 64], strides = [1, 1]} : vector<2x128xf32> to vector<2x64xf32>
    %85 = vector.extract_strided_slice %83 {offsets = [0, 64], sizes = [2, 64], strides = [1, 1]} : vector<2x128xf32> to vector<2x64xf32>
    %86 = vector.extract_strided_slice %71 {offsets = [0, 128], sizes = [2, 64], strides = [1, 1]} : vector<2x192xf32> to vector<2x64xf32>
    %87 = arith.mulf %84, %78 : vector<2x64xf32>
    %88 = arith.addf %86, %87 : vector<2x64xf32>
    %89 = math.tanh %88 : vector<2x64xf32>
    %cst_19 = arith.constant 1.000000e+00 : f32
    %90 = vector.broadcast %cst_19 : f32 to vector<2x64xf32>
    %91 = arith.subf %90, %85 : vector<2x64xf32>
    %92 = arith.mulf %91, %89 : vector<2x64xf32>
    %93 = arith.mulf %85, %70 : vector<2x64xf32>
    %94 = arith.addf %92, %93 : vector<2x64xf32>
    %95 = vector.extract_strided_slice %26 {offsets = [6, 0], sizes = [2, 192], strides = [1, 1]} : vector<16x192xf32> to vector<2x192xf32>
    %cst_20 = arith.constant dense<0.000000e+00> : vector<2x192xf32>
    %96 = tpu.matmul %94, %4, %cst_20 {dimension_numbers = #tpu.dot_dimension_numbers<[1], [0], [0], [1], [0, 0, 1, 1], [], []>} : vector<2x64xf32>, vector<64x192xf32>, vector<2x192xf32> -> vector<2x192xf32>
    %97 = vector.extract_strided_slice %95 {offsets = [0, 0], sizes = [2, 128], strides = [1, 1]} : vector<2x192xf32> to vector<2x128xf32>
    %98 = vector.extract_strided_slice %96 {offsets = [0, 0], sizes = [2, 128], strides = [1, 1]} : vector<2x192xf32> to vector<2x128xf32>
    %99 = arith.addf %97, %98 : vector<2x128xf32>
    %100 = vector.extract_strided_slice %96 {offsets = [0, 128], sizes = [2, 64], strides = [1, 1]} : vector<2x192xf32> to vector<2x64xf32>
    %101 = vector.broadcast %5 : vector<1x64xf32> to vector<2x64xf32>
    %102 = arith.addf %100, %101 : vector<2x64xf32>
    %103 = arith.negf %99 : vector<2x128xf32>
    %104 = math.exp %103 : vector<2x128xf32>
    %cst_21 = arith.constant 1.000000e+00 : f32
    %105 = vector.broadcast %cst_21 : f32 to vector<2x128xf32>
    %106 = arith.addf %105, %104 : vector<2x128xf32>
    %107 = arith.divf %105, %106 : vector<2x128xf32>
    %108 = vector.extract_strided_slice %107 {offsets = [0, 0], sizes = [2, 64], strides = [1, 1]} : vector<2x128xf32> to vector<2x64xf32>
    %109 = vector.extract_strided_slice %107 {offsets = [0, 64], sizes = [2, 64], strides = [1, 1]} : vector<2x128xf32> to vector<2x64xf32>
    %110 = vector.extract_strided_slice %95 {offsets = [0, 128], sizes = [2, 64], strides = [1, 1]} : vector<2x192xf32> to vector<2x64xf32>
    %111 = arith.mulf %108, %102 : vector<2x64xf32>
    %112 = arith.addf %110, %111 : vector<2x64xf32>
    %113 = math.tanh %112 : vector<2x64xf32>
    %cst_22 = arith.constant 1.000000e+00 : f32
    %114 = vector.broadcast %cst_22 : f32 to vector<2x64xf32>
    %115 = arith.subf %114, %109 : vector<2x64xf32>
    %116 = arith.mulf %115, %113 : vector<2x64xf32>
    %117 = arith.mulf %109, %94 : vector<2x64xf32>
    %118 = arith.addf %116, %117 : vector<2x64xf32>
    %119 = vector.extract_strided_slice %26 {offsets = [8, 0], sizes = [2, 192], strides = [1, 1]} : vector<16x192xf32> to vector<2x192xf32>
    %cst_23 = arith.constant dense<0.000000e+00> : vector<2x192xf32>
    %120 = tpu.matmul %118, %4, %cst_23 {dimension_numbers = #tpu.dot_dimension_numbers<[1], [0], [0], [1], [0, 0, 1, 1], [], []>} : vector<2x64xf32>, vector<64x192xf32>, vector<2x192xf32> -> vector<2x192xf32>
    %121 = vector.extract_strided_slice %119 {offsets = [0, 0], sizes = [2, 128], strides = [1, 1]} : vector<2x192xf32> to vector<2x128xf32>
    %122 = vector.extract_strided_slice %120 {offsets = [0, 0], sizes = [2, 128], strides = [1, 1]} : vector<2x192xf32> to vector<2x128xf32>
    %123 = arith.addf %121, %122 : vector<2x128xf32>
    %124 = vector.extract_strided_slice %120 {offsets = [0, 128], sizes = [2, 64], strides = [1, 1]} : vector<2x192xf32> to vector<2x64xf32>
    %125 = vector.broadcast %5 : vector<1x64xf32> to vector<2x64xf32>
    %126 = arith.addf %124, %125 : vector<2x64xf32>
    %127 = arith.negf %123 : vector<2x128xf32>
    %128 = math.exp %127 : vector<2x128xf32>
    %cst_24 = arith.constant 1.000000e+00 : f32
    %129 = vector.broadcast %cst_24 : f32 to vector<2x128xf32>
    %130 = arith.addf %129, %128 : vector<2x128xf32>
    %131 = arith.divf %129, %130 : vector<2x128xf32>
    %132 = vector.extract_strided_slice %131 {offsets = [0, 0], sizes = [2, 64], strides = [1, 1]} : vector<2x128xf32> to vector<2x64xf32>
    %133 = vector.extract_strided_slice %131 {offsets = [0, 64], sizes = [2, 64], strides = [1, 1]} : vector<2x128xf32> to vector<2x64xf32>
    %134 = vector.extract_strided_slice %119 {offsets = [0, 128], sizes = [2, 64], strides = [1, 1]} : vector<2x192xf32> to vector<2x64xf32>
    %135 = arith.mulf %132, %126 : vector<2x64xf32>
    %136 = arith.addf %134, %135 : vector<2x64xf32>
    %137 = math.tanh %136 : vector<2x64xf32>
    %cst_25 = arith.constant 1.000000e+00 : f32
    %138 = vector.broadcast %cst_25 : f32 to vector<2x64xf32>
    %139 = arith.subf %138, %133 : vector<2x64xf32>
    %140 = arith.mulf %139, %137 : vector<2x64xf32>
    %141 = arith.mulf %133, %118 : vector<2x64xf32>
    %142 = arith.addf %140, %141 : vector<2x64xf32>
    %143 = vector.extract_strided_slice %26 {offsets = [10, 0], sizes = [2, 192], strides = [1, 1]} : vector<16x192xf32> to vector<2x192xf32>
    %cst_26 = arith.constant dense<0.000000e+00> : vector<2x192xf32>
    %144 = tpu.matmul %142, %4, %cst_26 {dimension_numbers = #tpu.dot_dimension_numbers<[1], [0], [0], [1], [0, 0, 1, 1], [], []>} : vector<2x64xf32>, vector<64x192xf32>, vector<2x192xf32> -> vector<2x192xf32>
    %145 = vector.extract_strided_slice %143 {offsets = [0, 0], sizes = [2, 128], strides = [1, 1]} : vector<2x192xf32> to vector<2x128xf32>
    %146 = vector.extract_strided_slice %144 {offsets = [0, 0], sizes = [2, 128], strides = [1, 1]} : vector<2x192xf32> to vector<2x128xf32>
    %147 = arith.addf %145, %146 : vector<2x128xf32>
    %148 = vector.extract_strided_slice %144 {offsets = [0, 128], sizes = [2, 64], strides = [1, 1]} : vector<2x192xf32> to vector<2x64xf32>
    %149 = vector.broadcast %5 : vector<1x64xf32> to vector<2x64xf32>
    %150 = arith.addf %148, %149 : vector<2x64xf32>
    %151 = arith.negf %147 : vector<2x128xf32>
    %152 = math.exp %151 : vector<2x128xf32>
    %cst_27 = arith.constant 1.000000e+00 : f32
    %153 = vector.broadcast %cst_27 : f32 to vector<2x128xf32>
    %154 = arith.addf %153, %152 : vector<2x128xf32>
    %155 = arith.divf %153, %154 : vector<2x128xf32>
    %156 = vector.extract_strided_slice %155 {offsets = [0, 0], sizes = [2, 64], strides = [1, 1]} : vector<2x128xf32> to vector<2x64xf32>
    %157 = vector.extract_strided_slice %155 {offsets = [0, 64], sizes = [2, 64], strides = [1, 1]} : vector<2x128xf32> to vector<2x64xf32>
    %158 = vector.extract_strided_slice %143 {offsets = [0, 128], sizes = [2, 64], strides = [1, 1]} : vector<2x192xf32> to vector<2x64xf32>
    %159 = arith.mulf %156, %150 : vector<2x64xf32>
    %160 = arith.addf %158, %159 : vector<2x64xf32>
    %161 = math.tanh %160 : vector<2x64xf32>
    %cst_28 = arith.constant 1.000000e+00 : f32
    %162 = vector.broadcast %cst_28 : f32 to vector<2x64xf32>
    %163 = arith.subf %162, %157 : vector<2x64xf32>
    %164 = arith.mulf %163, %161 : vector<2x64xf32>
    %165 = arith.mulf %157, %142 : vector<2x64xf32>
    %166 = arith.addf %164, %165 : vector<2x64xf32>
    %167 = vector.extract_strided_slice %26 {offsets = [12, 0], sizes = [2, 192], strides = [1, 1]} : vector<16x192xf32> to vector<2x192xf32>
    %cst_29 = arith.constant dense<0.000000e+00> : vector<2x192xf32>
    %168 = tpu.matmul %166, %4, %cst_29 {dimension_numbers = #tpu.dot_dimension_numbers<[1], [0], [0], [1], [0, 0, 1, 1], [], []>} : vector<2x64xf32>, vector<64x192xf32>, vector<2x192xf32> -> vector<2x192xf32>
    %169 = vector.extract_strided_slice %167 {offsets = [0, 0], sizes = [2, 128], strides = [1, 1]} : vector<2x192xf32> to vector<2x128xf32>
    %170 = vector.extract_strided_slice %168 {offsets = [0, 0], sizes = [2, 128], strides = [1, 1]} : vector<2x192xf32> to vector<2x128xf32>
    %171 = arith.addf %169, %170 : vector<2x128xf32>
    %172 = vector.extract_strided_slice %168 {offsets = [0, 128], sizes = [2, 64], strides = [1, 1]} : vector<2x192xf32> to vector<2x64xf32>
    %173 = vector.broadcast %5 : vector<1x64xf32> to vector<2x64xf32>
    %174 = arith.addf %172, %173 : vector<2x64xf32>
    %175 = arith.negf %171 : vector<2x128xf32>
    %176 = math.exp %175 : vector<2x128xf32>
    %cst_30 = arith.constant 1.000000e+00 : f32
    %177 = vector.broadcast %cst_30 : f32 to vector<2x128xf32>
    %178 = arith.addf %177, %176 : vector<2x128xf32>
    %179 = arith.divf %177, %178 : vector<2x128xf32>
    %180 = vector.extract_strided_slice %179 {offsets = [0, 0], sizes = [2, 64], strides = [1, 1]} : vector<2x128xf32> to vector<2x64xf32>
    %181 = vector.extract_strided_slice %179 {offsets = [0, 64], sizes = [2, 64], strides = [1, 1]} : vector<2x128xf32> to vector<2x64xf32>
    %182 = vector.extract_strided_slice %167 {offsets = [0, 128], sizes = [2, 64], strides = [1, 1]} : vector<2x192xf32> to vector<2x64xf32>
    %183 = arith.mulf %180, %174 : vector<2x64xf32>
    %184 = arith.addf %182, %183 : vector<2x64xf32>
    %185 = math.tanh %184 : vector<2x64xf32>
    %cst_31 = arith.constant 1.000000e+00 : f32
    %186 = vector.broadcast %cst_31 : f32 to vector<2x64xf32>
    %187 = arith.subf %186, %181 : vector<2x64xf32>
    %188 = arith.mulf %187, %185 : vector<2x64xf32>
    %189 = arith.mulf %181, %166 : vector<2x64xf32>
    %190 = arith.addf %188, %189 : vector<2x64xf32>
    %191 = vector.extract_strided_slice %26 {offsets = [14, 0], sizes = [2, 192], strides = [1, 1]} : vector<16x192xf32> to vector<2x192xf32>
    %cst_32 = arith.constant dense<0.000000e+00> : vector<2x192xf32>
    %192 = tpu.matmul %190, %4, %cst_32 {dimension_numbers = #tpu.dot_dimension_numbers<[1], [0], [0], [1], [0, 0, 1, 1], [], []>} : vector<2x64xf32>, vector<64x192xf32>, vector<2x192xf32> -> vector<2x192xf32>
    %193 = vector.extract_strided_slice %191 {offsets = [0, 0], sizes = [2, 128], strides = [1, 1]} : vector<2x192xf32> to vector<2x128xf32>
    %194 = vector.extract_strided_slice %192 {offsets = [0, 0], sizes = [2, 128], strides = [1, 1]} : vector<2x192xf32> to vector<2x128xf32>
    %195 = arith.addf %193, %194 : vector<2x128xf32>
    %196 = vector.extract_strided_slice %192 {offsets = [0, 128], sizes = [2, 64], strides = [1, 1]} : vector<2x192xf32> to vector<2x64xf32>
    %197 = vector.broadcast %5 : vector<1x64xf32> to vector<2x64xf32>
    %198 = arith.addf %196, %197 : vector<2x64xf32>
    %199 = arith.negf %195 : vector<2x128xf32>
    %200 = math.exp %199 : vector<2x128xf32>
    %cst_33 = arith.constant 1.000000e+00 : f32
    %201 = vector.broadcast %cst_33 : f32 to vector<2x128xf32>
    %202 = arith.addf %201, %200 : vector<2x128xf32>
    %203 = arith.divf %201, %202 : vector<2x128xf32>
    %204 = vector.extract_strided_slice %203 {offsets = [0, 0], sizes = [2, 64], strides = [1, 1]} : vector<2x128xf32> to vector<2x64xf32>
    %205 = vector.extract_strided_slice %203 {offsets = [0, 64], sizes = [2, 64], strides = [1, 1]} : vector<2x128xf32> to vector<2x64xf32>
    %206 = vector.extract_strided_slice %191 {offsets = [0, 128], sizes = [2, 64], strides = [1, 1]} : vector<2x192xf32> to vector<2x64xf32>
    %207 = arith.mulf %204, %198 : vector<2x64xf32>
    %208 = arith.addf %206, %207 : vector<2x64xf32>
    %209 = math.tanh %208 : vector<2x64xf32>
    %cst_34 = arith.constant 1.000000e+00 : f32
    %210 = vector.broadcast %cst_34 : f32 to vector<2x64xf32>
    %211 = arith.subf %210, %205 : vector<2x64xf32>
    %212 = arith.mulf %211, %209 : vector<2x64xf32>
    %213 = arith.mulf %205, %190 : vector<2x64xf32>
    %214 = arith.addf %212, %213 : vector<2x64xf32>
    %215 = vector.extract_strided_slice %46 {offsets = [0, 0], sizes = [2, 32], strides = [1, 1]} : vector<2x64xf32> to vector<2x32xf32>
    %216 = vector.extract_strided_slice %214 {offsets = [0, 32], sizes = [2, 32], strides = [1, 1]} : vector<2x64xf32> to vector<2x32xf32>
    %217 = tpu.concatenate %215, %216 in 1 : vector<2x32xf32>, vector<2x32xf32> -> vector<2x64xf32>
    %218 = vector.extract_strided_slice %70 {offsets = [0, 0], sizes = [2, 32], strides = [1, 1]} : vector<2x64xf32> to vector<2x32xf32>
    %219 = vector.extract_strided_slice %190 {offsets = [0, 32], sizes = [2, 32], strides = [1, 1]} : vector<2x64xf32> to vector<2x32xf32>
    %220 = tpu.concatenate %218, %219 in 1 : vector<2x32xf32>, vector<2x32xf32> -> vector<2x64xf32>
    %221 = vector.extract_strided_slice %94 {offsets = [0, 0], sizes = [2, 32], strides = [1, 1]} : vector<2x64xf32> to vector<2x32xf32>
    %222 = vector.extract_strided_slice %166 {offsets = [0, 32], sizes = [2, 32], strides = [1, 1]} : vector<2x64xf32> to vector<2x32xf32>
    %223 = tpu.concatenate %221, %222 in 1 : vector<2x32xf32>, vector<2x32xf32> -> vector<2x64xf32>
    %224 = vector.extract_strided_slice %118 {offsets = [0, 0], sizes = [2, 32], strides = [1, 1]} : vector<2x64xf32> to vector<2x32xf32>
    %225 = vector.extract_strided_slice %142 {offsets = [0, 32], sizes = [2, 32], strides = [1, 1]} : vector<2x64xf32> to vector<2x32xf32>
    %226 = tpu.concatenate %224, %225 in 1 : vector<2x32xf32>, vector<2x32xf32> -> vector<2x64xf32>
    %227 = vector.extract_strided_slice %142 {offsets = [0, 0], sizes = [2, 32], strides = [1, 1]} : vector<2x64xf32> to vector<2x32xf32>
    %228 = vector.extract_strided_slice %118 {offsets = [0, 32], sizes = [2, 32], strides = [1, 1]} : vector<2x64xf32> to vector<2x32xf32>
    %229 = tpu.concatenate %227, %228 in 1 : vector<2x32xf32>, vector<2x32xf32> -> vector<2x64xf32>
    %230 = vector.extract_strided_slice %166 {offsets = [0, 0], sizes = [2, 32], strides = [1, 1]} : vector<2x64xf32> to vector<2x32xf32>
    %231 = vector.extract_strided_slice %94 {offsets = [0, 32], sizes = [2, 32], strides = [1, 1]} : vector<2x64xf32> to vector<2x32xf32>
    %232 = tpu.concatenate %230, %231 in 1 : vector<2x32xf32>, vector<2x32xf32> -> vector<2x64xf32>
    %233 = vector.extract_strided_slice %190 {offsets = [0, 0], sizes = [2, 32], strides = [1, 1]} : vector<2x64xf32> to vector<2x32xf32>
    %234 = vector.extract_strided_slice %70 {offsets = [0, 32], sizes = [2, 32], strides = [1, 1]} : vector<2x64xf32> to vector<2x32xf32>
    %235 = tpu.concatenate %233, %234 in 1 : vector<2x32xf32>, vector<2x32xf32> -> vector<2x64xf32>
    %236 = vector.extract_strided_slice %214 {offsets = [0, 0], sizes = [2, 32], strides = [1, 1]} : vector<2x64xf32> to vector<2x32xf32>
    %237 = vector.extract_strided_slice %46 {offsets = [0, 32], sizes = [2, 32], strides = [1, 1]} : vector<2x64xf32> to vector<2x32xf32>
    %238 = tpu.concatenate %236, %237 in 1 : vector<2x32xf32>, vector<2x32xf32> -> vector<2x64xf32>
    %239 = tpu.concatenate %217, %220, %223, %226, %229, %232, %235, %238 in 0 : vector<2x64xf32>, vector<2x64xf32>, vector<2x64xf32>, vector<2x64xf32>, vector<2x64xf32>, vector<2x64xf32>, vector<2x64xf32>, vector<2x64xf32> -> vector<16x64xf32>
    %c0_35 = arith.constant 0 : index
    %c0_36 = arith.constant 0 : index
    %240 = vector.load %arg7[%c0_35, %c0_36] : memref<64x32xf32, #tpu.memory_space<vmem>>, vector<64x32xf32>
    %cst_37 = arith.constant dense<0.000000e+00> : vector<16x32xf32>
    %241 = tpu.matmul %239, %240, %cst_37 {dimension_numbers = #tpu.dot_dimension_numbers<[1], [0], [0], [1], [0, 0, 1, 1], [], []>} : vector<16x64xf32>, vector<64x32xf32>, vector<16x32xf32> -> vector<16x32xf32>
    %c0_38 = arith.constant 0 : index
    %c0_39 = arith.constant 0 : index
    %242 = vector.load %arg8[%c0_38, %c0_39] : memref<1x32xf32, #tpu.memory_space<vmem>>, vector<1x32xf32>
    %243 = vector.broadcast %242 : vector<1x32xf32> to vector<16x32xf32>
    %244 = arith.addf %241, %243 : vector<16x32xf32>
    %245 = math.tanh %244 : vector<16x32xf32>
    %c0_40 = arith.constant 0 : index
    %c0_41 = arith.constant 0 : index
    %246 = vector.load %arg9[%c0_40, %c0_41] : memref<1x32xf32, #tpu.memory_space<vmem>>, vector<1x32xf32>
    %247 = vector.extract_strided_slice %245 {offsets = [0, 0], sizes = [2, 32], strides = [1, 1]} : vector<16x32xf32> to vector<2x32xf32>
    %248 = vector.broadcast %246 : vector<1x32xf32> to vector<2x32xf32>
    %249 = arith.mulf %247, %248 : vector<2x32xf32>
    %cst_42 = arith.constant dense<0.000000e+00> : vector<2xf32>
    %250 = vector.multi_reduction <add>, %249, %cst_42 [1] : vector<2x32xf32> to vector<2xf32>
    %251 = vector.shape_cast %250 : vector<2xf32> to vector<2x1xf32>
    %252 = vector.extract_strided_slice %245 {offsets = [2, 0], sizes = [2, 32], strides = [1, 1]} : vector<16x32xf32> to vector<2x32xf32>
    %253 = vector.broadcast %246 : vector<1x32xf32> to vector<2x32xf32>
    %254 = arith.mulf %252, %253 : vector<2x32xf32>
    %cst_43 = arith.constant dense<0.000000e+00> : vector<2xf32>
    %255 = vector.multi_reduction <add>, %254, %cst_43 [1] : vector<2x32xf32> to vector<2xf32>
    %256 = vector.shape_cast %255 : vector<2xf32> to vector<2x1xf32>
    %257 = vector.extract_strided_slice %245 {offsets = [4, 0], sizes = [2, 32], strides = [1, 1]} : vector<16x32xf32> to vector<2x32xf32>
    %258 = vector.broadcast %246 : vector<1x32xf32> to vector<2x32xf32>
    %259 = arith.mulf %257, %258 : vector<2x32xf32>
    %cst_44 = arith.constant dense<0.000000e+00> : vector<2xf32>
    %260 = vector.multi_reduction <add>, %259, %cst_44 [1] : vector<2x32xf32> to vector<2xf32>
    %261 = vector.shape_cast %260 : vector<2xf32> to vector<2x1xf32>
    %262 = vector.extract_strided_slice %245 {offsets = [6, 0], sizes = [2, 32], strides = [1, 1]} : vector<16x32xf32> to vector<2x32xf32>
    %263 = vector.broadcast %246 : vector<1x32xf32> to vector<2x32xf32>
    %264 = arith.mulf %262, %263 : vector<2x32xf32>
    %cst_45 = arith.constant dense<0.000000e+00> : vector<2xf32>
    %265 = vector.multi_reduction <add>, %264, %cst_45 [1] : vector<2x32xf32> to vector<2xf32>
    %266 = vector.shape_cast %265 : vector<2xf32> to vector<2x1xf32>
    %267 = vector.extract_strided_slice %245 {offsets = [8, 0], sizes = [2, 32], strides = [1, 1]} : vector<16x32xf32> to vector<2x32xf32>
    %268 = vector.broadcast %246 : vector<1x32xf32> to vector<2x32xf32>
    %269 = arith.mulf %267, %268 : vector<2x32xf32>
    %cst_46 = arith.constant dense<0.000000e+00> : vector<2xf32>
    %270 = vector.multi_reduction <add>, %269, %cst_46 [1] : vector<2x32xf32> to vector<2xf32>
    %271 = vector.shape_cast %270 : vector<2xf32> to vector<2x1xf32>
    %272 = vector.extract_strided_slice %245 {offsets = [10, 0], sizes = [2, 32], strides = [1, 1]} : vector<16x32xf32> to vector<2x32xf32>
    %273 = vector.broadcast %246 : vector<1x32xf32> to vector<2x32xf32>
    %274 = arith.mulf %272, %273 : vector<2x32xf32>
    %cst_47 = arith.constant dense<0.000000e+00> : vector<2xf32>
    %275 = vector.multi_reduction <add>, %274, %cst_47 [1] : vector<2x32xf32> to vector<2xf32>
    %276 = vector.shape_cast %275 : vector<2xf32> to vector<2x1xf32>
    %277 = vector.extract_strided_slice %245 {offsets = [12, 0], sizes = [2, 32], strides = [1, 1]} : vector<16x32xf32> to vector<2x32xf32>
    %278 = vector.broadcast %246 : vector<1x32xf32> to vector<2x32xf32>
    %279 = arith.mulf %277, %278 : vector<2x32xf32>
    %cst_48 = arith.constant dense<0.000000e+00> : vector<2xf32>
    %280 = vector.multi_reduction <add>, %279, %cst_48 [1] : vector<2x32xf32> to vector<2xf32>
    %281 = vector.shape_cast %280 : vector<2xf32> to vector<2x1xf32>
    %282 = vector.extract_strided_slice %245 {offsets = [14, 0], sizes = [2, 32], strides = [1, 1]} : vector<16x32xf32> to vector<2x32xf32>
    %283 = vector.broadcast %246 : vector<1x32xf32> to vector<2x32xf32>
    %284 = arith.mulf %282, %283 : vector<2x32xf32>
    %cst_49 = arith.constant dense<0.000000e+00> : vector<2xf32>
    %285 = vector.multi_reduction <add>, %284, %cst_49 [1] : vector<2x32xf32> to vector<2xf32>
    %286 = vector.shape_cast %285 : vector<2xf32> to vector<2x1xf32>
    %287 = tpu.concatenate %251, %256, %261, %266, %271, %276, %281, %286 in 1 : vector<2x1xf32>, vector<2x1xf32>, vector<2x1xf32>, vector<2x1xf32>, vector<2x1xf32>, vector<2x1xf32>, vector<2x1xf32>, vector<2x1xf32> -> vector<2x8xf32>
    %cst_50 = arith.constant dense<0xFF800000> : vector<2xf32>
    %288 = vector.multi_reduction <maximumf>, %287, %cst_50 [1] : vector<2x8xf32> to vector<2xf32>
    %289 = vector.shape_cast %288 : vector<2xf32> to vector<2x1xf32>
    %290 = vector.broadcast %289 : vector<2x1xf32> to vector<2x8xf32>
    %291 = arith.subf %287, %290 : vector<2x8xf32>
    %292 = math.exp %291 : vector<2x8xf32>
    %cst_51 = arith.constant dense<0.000000e+00> : vector<2xf32>
    %293 = vector.multi_reduction <add>, %292, %cst_51 [1] : vector<2x8xf32> to vector<2xf32>
    %294 = vector.shape_cast %293 : vector<2xf32> to vector<2x1xf32>
    %295 = tpu.reciprocal %294 : vector<2x1xf32> -> vector<2x1xf32>
    %296 = vector.broadcast %295 : vector<2x1xf32> to vector<2x8xf32>
    %297 = arith.mulf %292, %296 : vector<2x8xf32>
    %298 = vector.extract_strided_slice %297 {offsets = [0, 0], sizes = [2, 1], strides = [1, 1]} : vector<2x8xf32> to vector<2x1xf32>
    %299 = vector.broadcast %298 : vector<2x1xf32> to vector<2x64xf32>
    %300 = arith.mulf %217, %299 : vector<2x64xf32>
    %301 = vector.extract_strided_slice %297 {offsets = [0, 1], sizes = [2, 1], strides = [1, 1]} : vector<2x8xf32> to vector<2x1xf32>
    %302 = vector.broadcast %301 : vector<2x1xf32> to vector<2x64xf32>
    %303 = arith.mulf %220, %302 : vector<2x64xf32>
    %304 = vector.extract_strided_slice %297 {offsets = [0, 2], sizes = [2, 1], strides = [1, 1]} : vector<2x8xf32> to vector<2x1xf32>
    %305 = vector.broadcast %304 : vector<2x1xf32> to vector<2x64xf32>
    %306 = arith.mulf %223, %305 : vector<2x64xf32>
    %307 = vector.extract_strided_slice %297 {offsets = [0, 3], sizes = [2, 1], strides = [1, 1]} : vector<2x8xf32> to vector<2x1xf32>
    %308 = vector.broadcast %307 : vector<2x1xf32> to vector<2x64xf32>
    %309 = arith.mulf %226, %308 : vector<2x64xf32>
    %310 = vector.extract_strided_slice %297 {offsets = [0, 4], sizes = [2, 1], strides = [1, 1]} : vector<2x8xf32> to vector<2x1xf32>
    %311 = vector.broadcast %310 : vector<2x1xf32> to vector<2x64xf32>
    %312 = arith.mulf %229, %311 : vector<2x64xf32>
    %313 = vector.extract_strided_slice %297 {offsets = [0, 5], sizes = [2, 1], strides = [1, 1]} : vector<2x8xf32> to vector<2x1xf32>
    %314 = vector.broadcast %313 : vector<2x1xf32> to vector<2x64xf32>
    %315 = arith.mulf %232, %314 : vector<2x64xf32>
    %316 = vector.extract_strided_slice %297 {offsets = [0, 6], sizes = [2, 1], strides = [1, 1]} : vector<2x8xf32> to vector<2x1xf32>
    %317 = vector.broadcast %316 : vector<2x1xf32> to vector<2x64xf32>
    %318 = arith.mulf %235, %317 : vector<2x64xf32>
    %319 = vector.extract_strided_slice %297 {offsets = [0, 7], sizes = [2, 1], strides = [1, 1]} : vector<2x8xf32> to vector<2x1xf32>
    %320 = vector.broadcast %319 : vector<2x1xf32> to vector<2x64xf32>
    %321 = arith.mulf %238, %320 : vector<2x64xf32>
    %322 = tpu.concatenate %300, %303, %306, %309, %312, %315, %318, %321 in 1 : vector<2x64xf32>, vector<2x64xf32>, vector<2x64xf32>, vector<2x64xf32>, vector<2x64xf32>, vector<2x64xf32>, vector<2x64xf32>, vector<2x64xf32> -> vector<2x512xf32>
    %c0_52 = arith.constant 0 : index
    %c0_53 = arith.constant 0 : index
    %323 = vector.load %arg10[%c0_52, %c0_53] : memref<2x512xf32, #tpu.memory_space<vmem>>, vector<2x512xf32>
    tpu.vector_store %arg10[%c0_52, %c0_53], %322 {strides = array<i32>} : memref<2x512xf32, #tpu.memory_space<vmem>>, vector<2x512xf32>,
    return
  }
  func.func @transform_0(%arg0: i32) -> (i32, i32) {
    %c0_i32 = arith.constant 0 : i32
    %c0_i32_0 = arith.constant 0 : i32
    %c0_i32_1 = arith.constant 0 : i32
    return %c0_i32, %c0_i32_0 : i32, i32
  }
  func.func @transform_1(%arg0: i32) -> (i32, i32) {
    %c0_i32 = arith.constant 0 : i32
    %c0_i32_0 = arith.constant 0 : i32
    %c0_i32_1 = arith.constant 0 : i32
    return %c0_i32, %c0_i32_0 : i32, i32
  }
  func.func @transform_2(%arg0: i32) -> (i32, i32) {
    %c0_i32 = arith.constant 0 : i32
    %c0_i32_0 = arith.constant 0 : i32
    %c0_i32_1 = arith.constant 0 : i32
    return %c0_i32, %c0_i32_0 : i32, i32
  }
  func.func @transform_3(%arg0: i32) -> (i32, i32) {
    %c0_i32 = arith.constant 0 : i32
    %c0_i32_0 = arith.constant 0 : i32
    %c0_i32_1 = arith.constant 0 : i32
    return %c0_i32, %c0_i32_0 : i32, i32
  }
  func.func @transform_4(%arg0: i32) -> (i32, i32) {
    %c0_i32 = arith.constant 0 : i32
    %c0_i32_0 = arith.constant 0 : i32
    %c0_i32_1 = arith.constant 0 : i32
    return %c0_i32, %c0_i32_0 : i32, i32
  }
  func.func @transform_5(%arg0: i32) -> (i32, i32) {
    %c0_i32 = arith.constant 0 : i32
    %c0_i32_0 = arith.constant 0 : i32
    %c0_i32_1 = arith.constant 0 : i32
    return %c0_i32, %c0_i32_0 : i32, i32
  }
  func.func @transform_6(%arg0: i32) -> (i32, i32) {
    %c0_i32 = arith.constant 0 : i32
    %c0_i32_0 = arith.constant 0 : i32
    %c0_i32_1 = arith.constant 0 : i32
    return %c0_i32, %c0_i32_0 : i32, i32
  }
  func.func @transform_7(%arg0: i32) -> (i32, i32) {
    %c0_i32 = arith.constant 0 : i32
    %c0_i32_0 = arith.constant 0 : i32
    %c0_i32_1 = arith.constant 0 : i32
    return %c0_i32, %c0_i32_0 : i32, i32
  }
  func.func @transform_8(%arg0: i32) -> (i32, i32) {
    %c0_i32 = arith.constant 0 : i32
    %c0_i32_0 = arith.constant 0 : i32
    %c0_i32_1 = arith.constant 0 : i32
    return %c0_i32, %c0_i32_0 : i32, i32
  }
  func.func @transform_9(%arg0: i32) -> (i32, i32) {
    %c0_i32 = arith.constant 0 : i32
    %c0_i32_0 = arith.constant 0 : i32
    %c0_i32_1 = arith.constant 0 : i32
    return %c0_i32, %c0_i32_0 : i32, i32
  }
}

</mosaic_0001>

<bundles_post_ra>
// kernel: tpu_custom_call.1
= control target key start
LH: loop header
LB: loop body
LE: loop exit
PB: predicated region body
PF: predicated region fallthrough
CT: control target
= control target key end

     0   :  { %s2200_s0 = inlined_call_operand.vmem [shape: s32[16,2], index: 0, kind: input, shape index: {}]   ;;  %s2201_s1 = inlined_call_operand.vmem [shape: f32[16,2], index: 1, kind: input, shape index: {}]   ;;  %s2202_s2 = inlined_call_operand.vmem [shape: f32[128,192], index: 2, kind: input, shape index: {}]   ;;  %s2203_s3 = inlined_call_operand.vmem [shape: f32[1,192], index: 3, kind: input, shape index: {}]   ;;  %s2204_s4 = inlined_call_operand.vmem [shape: f32[64,192], index: 4, kind: input, shape index: {}]   ;;  %s2205_s5 = inlined_call_operand.vmem [shape: f32[1,64], index: 5, kind: input, shape index: {}]   ;;  %s2206_s6 = inlined_call_operand.vmem [shape: f32[64,32], index: 6, kind: input, shape index: {}]   ;;  %s2207_s7 = inlined_call_operand.vmem [shape: f32[1,32], index: 7, kind: input, shape index: {}]   ;;  %s2208_s8 = inlined_call_operand.vmem [shape: f32[1,32], index: 8, kind: input, shape index: {}]   ;;  %s2209_s9 = inlined_call_operand.hbm [shape: f32[2,512], index: 9, kind: output, shape index: {}]  }
   0x1   :  { %v33_v0 = vld [vmem:[%s2200_s0] sm:$0xff] }
   0x2   :  { %14 = vsyncpa [#allocation3], 0  ;;  %v1654_v1 = vmov 1   ;;  %v1655_v2 = vmov 0   ;;  %v35_v3 = vld [vmem:[%s2201_s1] sm:$0xff]  ;;  %v1656_v4 = vmov 0.0   ;;  %v87_v53 = vlaneseq }
   0x3   :  { %1560 = vset.pattern.permute.xlu0 %v1654_v1  ;;  %1561 = vset.pattern.permute.xlu1 %v1655_v2  ;;  %v38_v5 = vld [vmem:[%s2202_s2 + $0x8] sm:$0xff]  ;;  %v40_v6 = vld [vmem:[%s2202_s2 + $0x18] sm:$0xff]  ;;  %v37_v7 = vld [vmem:[%s2202_s2] sm:$0xff]  ;;  %s1657_s14 = smov 64   ;;  %vm143_vm2 = vcmask 523264   ;;  %vm982_vm5 = vcmask 261120  }
   0x4   :  { %114 = vperm.xlu0 %1560, %v33_v0   ;;  %90 = vperm.xlu1 %1561, %v33_v0   ;;  %v1388_v8 = vpack.c.bf16 %v40_v6, %v38_v5  ;;  %v39_v9 = vld [vmem:[%s2202_s2 + $0x10] sm:$0xff]  ;;  %v42_v10 = vld [vmem:[%s2202_s2 + $0x28] sm:$0xff]  ;;  %v44_v11 = vld [vmem:[%s2202_s2 + $0x38] sm:$0xff]  ;;  %v1823_v54 = vand.u32 127, %v87_v53  ;;  %vm1033_vm6 = vcmask 1041408   ;;  %vm1037_vm7 = vcmask 1045504  }
   0x5   :  { %221 = vmatprep.mubr.f32.mxu0 %v1656_v4  ;;  %326 = vmatprep.mubr.f32.mxu1 %v1656_v4  ;;  %v1390_v12 = vpack.c.bf16 %v39_v9, %v37_v7  ;;  %v1392_v13 = vpack.c.bf16 %v44_v11, %v42_v10  ;;  %v41_v14 = vld [vmem:[%s2202_s2 + $0x20] sm:$0xff]  ;;  %v43_v15 = vld [vmem:[%s2202_s2 + $0x30] sm:$0xff]  ;;  %v46_v16 = vld [vmem:[%s2202_s2 + $0x48] sm:$0xff]  ;;  %vm1035_vm8 = vcmask 1043456   ;;  %vm1152_vm9 = vcmask 257026  }
   0x6   :  { %1389 = vmatprep.subr.bf16.mxu0 %v1388_v8  ;;  %v48_v17 = vld [vmem:[%s2202_s2 + $0x58] sm:$0xff]  ;;  %v1394_v18 = vpack.c.bf16 %v43_v15, %v41_v14  ;;  %v45_v20 = vld [vmem:[%s2202_s2 + $0x40] sm:$0xff]  ;;  %v47_v21 = vld [vmem:[%s2202_s2 + $0x50] sm:$0xff]  ;;  %vm1148_vm10 = vcmask 254976   ;;  %vm1156_vm11 = vcmask 259076   ;;  %vm1160_vm12 = vcmask 261126  }
   0x7   :  { %1391 = vmatpush1.bf16.msra.mxu0 %v1390_v12  ;;  %v1396_v19 = vpack.c.bf16 %v48_v17, %v46_v16  ;;  %v50_v22 = vld [vmem:[%s2202_s2 + $0x68] sm:$0xff]  ;;  %v52_v23 = vld [vmem:[%s2202_s2 + $0x78] sm:$0xff]  ;;  %v1398_v24 = vpack.c.bf16 %v47_v21, %v45_v20  ;;  %v49_v26 = vld [vmem:[%s2202_s2 + $0x60] sm:$0xff]  ;;  %vm1195_vm13 = vcmask 7168   ;;  %vm1197_vm14 = vcmask 15360  }
   0x8   :  { %126 = vperm.xlu0 %1560, %v35_v3   ;;  %103 = vperm.xlu1 %1561, %v35_v3   ;;  %v1400_v25 = vpack.c.bf16 %v52_v23, %v50_v22  ;;  %v51_v27 = vld [vmem:[%s2202_s2 + $0x70] sm:$0xff]  ;;  %v54_v28 = vld [vmem:[%s2202_s2 + $0x88] sm:$0xff]  ;;  %v56_v29 = vld [vmem:[%s2202_s2 + $0x98] sm:$0xff]  ;;  %v1832_v3 = vshrl.u32 %v87_v53, 7  ;;  %vm1199_vm15 = vcmask 23552  }
   0x9   :  { %1393 = vmatprep.subr.bf16.mxu0 %v1392_v13  ;;  %v1402_v30 = vpack.c.bf16 %v51_v27, %v49_v26  ;;  %v1404_v31 = vpack.c.bf16 %v56_v29, %v54_v28  ;;  %v53_v32 = vld [vmem:[%s2202_s2 + $0x80] sm:$0xff]  ;;  %v55_v33 = vld [vmem:[%s2202_s2 + $0x90] sm:$0xff]  ;;  %v58_v34 = vld [vmem:[%s2202_s2 + $0xa8] sm:$0xff] }
   0xa   :  { %v60_v35 = vld [vmem:[%s2202_s2 + $0xb8] sm:$0xff]  ;;  %v1406_v36 = vpack.c.bf16 %v55_v33, %v53_v32  ;;  %v57_v38 = vld [vmem:[%s2202_s2 + $0xa0] sm:$0xff]  ;;  %v59_v39 = vld [vmem:[%s2202_s2 + $0xb0] sm:$0xff]  ;;  %v149_v5 = vsub.s32 0, %v1832_v3  ;;  %v153_v14 = vsub.s32 1, %v1832_v3 }
   0xb   :  { %1395 = vmatpush1.bf16.msra.mxu0 %v1394_v18  ;;  %v1408_v37 = vpack.c.bf16 %v60_v35, %v58_v34  ;;  %v62_v40 = vld [vmem:[%s2202_s2 + $0xc8] sm:$0xff]  ;;  %v64_v41 = vld [vmem:[%s2202_s2 + $0xd8] sm:$0xff]  ;;  %v1410_v42 = vpack.c.bf16 %v59_v39, %v57_v38  ;;  %v61_v44 = vld [vmem:[%s2202_s2 + $0xc0] sm:$0xff] }
   0xc   :  { %1562 = vset.pattern.permute.xlu1 %v1654_v1  ;;  %1397 = vmatprep.subr.bf16.mxu0 %v1396_v19  ;;  %v1412_v43 = vpack.c.bf16 %v64_v41, %v62_v40  ;;  %v63_v45 = vld [vmem:[%s2202_s2 + $0xd0] sm:$0xff]  ;;  %v66_v46 = vld [vmem:[%s2202_s2 + $0xe8] sm:$0xff]  ;;  %v68_v47 = vld [vmem:[%s2202_s2 + $0xf8] sm:$0xff] }
   0xd   :  { %v1414_v48 = vpack.c.bf16 %v63_v45, %v61_v44  ;;  %v1416_v49 = vpack.c.bf16 %v68_v47, %v66_v46  ;;  %v65_v50 = vld [vmem:[%s2202_s2 + $0xe0] sm:$0xff]  ;;  %v67_v51 = vld [vmem:[%s2202_s2 + $0xf0] sm:$0xff]  ;;  %v71_v21 = vld [vmem:[%s2204_s4 + $0x8] sm:$0xff] }
   0xe   :  { %v1418_v52 = vpack.c.bf16 %v67_v51, %v65_v50  ;;  %v69_v6 = vld [vmem:[%s2203_s3] sm:$0x3]  ;;  %v73_v22 = vld [vmem:[%s2204_s4 + $0x18] sm:$0xff]  ;;  %v75_v26 = vld [vmem:[%s2204_s4 + $0x28] sm:$0xff] }
   0xf   :  { %1399 = vmatpush1.bf16.msra.mxu0 %v1398_v24  ;;  %v1838_v7 = vrot.slane %v69_v6, %v149_v5  ;;  %v1845_v15 = vrot.slane %v69_v6, %v153_v14  ;;  %v1850_v16 = vld [vmem:[%s2205_s5] ss:$0 sm:$0xff]  ;;  %v1866_v24 = vpack.c.bf16 %v73_v22, %v71_v21  ;;  %v77_v27 = vld [vmem:[%s2204_s4 + $0x38] sm:$0xff]  ;;  %v79_v32 = vld [vmem:[%s2204_s4 + $0x48] sm:$0xff] }
  0x10   :  { %1401 = vmatprep.subr.bf16.mxu0 %v1400_v25  ;;  %v70_v23 = vld [vmem:[%s2204_s4] sm:$0xff]  ;;  %v72_v25 = vld [vmem:[%s2204_s4 + $0x10] sm:$0xff]  ;;  %v1879_v29 = vpack.c.bf16 %v77_v27, %v75_v26  ;;  %v81_v33 = vld [vmem:[%s2204_s4 + $0x58] sm:$0xff] }
  0x11   :  { %v1877_v28 = vpack.c.bf16 %v72_v25, %v70_v23  ;;  %1421 = vmatprep.subr.bf16.mxu1 %v1866_v24  ;;  %v1900_v35 = vpack.c.bf16 %v81_v33, %v79_v32  ;;  %v83_v38 = vld [vmem:[%s2204_s4 + $0x68] sm:$0xff]  ;;  %v85_v39 = vld [vmem:[%s2204_s4 + $0x78] sm:$0xff]  ;;  %v84_v44 = vld [vmem:[%s2204_s4 + $0x70] sm:$0xff] }
  0x13   :  { %1403 = vmatpush1.bf16.msra.mxu0 %v1402_v30  ;;  %v74_v30 = vld [vmem:[%s2204_s4 + $0x20] sm:$0xff]  ;;  %1423 = vmatpush1.bf16.msra.mxu1 %v1877_v28 }
  0x14   :  { %1405 = vmatprep.subr.bf16.mxu0 %v1404_v31  ;;  %v76_v31 = vld [vmem:[%s2204_s4 + $0x30] sm:$0xff]  ;;  %1425 = vmatprep.subr.bf16.mxu1 %v1879_v29 }
  0x15   :  { %v1896_v34 = vpack.c.bf16 %v76_v31, %v74_v30 }
  0x17   :  { %1407 = vmatpush1.bf16.msra.mxu0 %v1406_v36  ;;  %v78_v36 = vld [vmem:[%s2204_s4 + $0x40] sm:$0xff]  ;;  %1427 = vmatpush1.bf16.msra.mxu1 %v1896_v34 }
  0x18   :  { %1409 = vmatprep.subr.bf16.mxu0 %v1408_v37  ;;  %v80_v37 = vld [vmem:[%s2204_s4 + $0x50] sm:$0xff]  ;;  %1429 = vmatprep.subr.bf16.mxu1 %v1900_v35 }
  0x19   :  { %v1916_v41 = vpack.c.bf16 %v80_v37, %v78_v36 }
  0x1b   :  { %1411 = vmatpush1.bf16.msra.mxu0 %v1410_v42  ;;  %v1921_v42 = vpack.c.bf16 %v85_v39, %v83_v38  ;;  %1431 = vmatpush1.bf16.msra.mxu1 %v1916_v41 }
  0x1c   :  { %1413 = vmatprep.subr.bf16.mxu0 %v1412_v43  ;;  %v82_v43 = vld [vmem:[%s2204_s4 + $0x60] sm:$0xff] }
  0x1d   :  { %v1931_v45 = vpack.c.bf16 %v84_v44, %v82_v43  ;;  %1433 = vmatprep.subr.bf16.mxu1 %v1921_v42 }
  0x1f   :  { %1415 = vmatpush1.bf16.msra.mxu0 %v1414_v48  ;;  %1435 = vmatpush1.bf16.msra.mxu1 %v1931_v45 }
  0x20   :  { %1417 = vmatprep.subr.bf16.mxu0 %v1416_v49  ;;  %1437 = vmatprep.subr.bf16.mxu1 %v1866_v24 }
  0x23   :  { %1419 = vmatpush1.bf16.msra.mxu0 %v1418_v52 }
  0x24   :  { %1453 = vmatprep.subr.bf16.mxu0 %v1866_v24 }
  0x83   :  { %v115_v55 = vpop.permute.xlu0 %114  ;;  %v91_v59 = vpop.permute.xlu1 %90 }
  0x84   :  { %vm119_vm0 = vcmp.eq.s32.totalorder %v115_v55, %v1823_v54  ;;  %vm95_vm1 = vcmp.eq.s32.totalorder %v91_v59, %v1823_v54 }
  0x85   :  { %v1337_v56 = vsel %vm119_vm0, 1.0, %v1656_v4  ;;  %v1335_v60 = vsel %vm95_vm1, 1.0, %v1656_v4  ;;  %vm1201_vm0 = vcmask 31744   ;;  %vm1203_vm1 = vcmask 39936  }
  0x87   :  { %v127_v57 = vpop.permute.xlu0 %126  ;;  %v104_v61 = vpop.permute.xlu1 %103 }
  0x88   :  { %v133_v58 = vmul.f32 %v1337_v56, %v127_v57  ;;  %v111_v62 = vmul.f32 %v1335_v60, %v104_v61 }
  0x8a   :  { %137 = vrot.lane.b32.xlu0 %v133_v58, %s1657_s14 }
  0xfc   :  { %v138_v63 = vpop.permute.xlu0 %137 }
  0xfd   :  { %v144_v0 = vsel %vm143_vm2, %v111_v62, %v138_v63 }
  0xfe   :  { %222 = vmatmul.mubr.f32.vlgmr.msra.gmra.mrb[0].mxu0 %v144_v0 }
  0xff   :  { %227 = vmatprep.mubr.f32.mxu0 %v1656_v4  ;;  %1455 = vmatpush1.bf16.msra.mxu0 %v1877_v28 }
 0x100   :  { %1457 = vmatprep.subr.bf16.mxu0 %v1879_v29 }
 0x103   :  { %1459 = vmatpush1.bf16.msra.mxu0 %v1896_v34 }
 0x104   :  { %1461 = vmatprep.subr.bf16.mxu0 %v1900_v35 }
 0x107   :  { %1463 = vmatpush1.bf16.msra.mxu0 %v1916_v41 }
 0x108   :  { %1465 = vmatprep.subr.bf16.mxu0 %v1921_v42 }
 0x10b   :  { %1467 = vmatpush1.bf16.msra.mxu0 %v1931_v45 }
 0x10c   :  { %1485 = vmatprep.subr.bf16.mxu0 %v1866_v24 }
 0x1d1   :  { %v223_v8 = vpop.f32.mrb[0].mxu0 }
 0x1d2   :  { %v1841_v9 = vadd.f32 %v223_v8, %v1838_v7  ;;  %v225_v10 = vpop.f32.mrb[1].mxu0 }
 0x1d3   :  { %v1853_v18 = vadd.f32 %v225_v10, %v1845_v15  ;;  %v34_v10 = vld [vmem:[%s2200_s0 + $0x8] sm:$0xff] }
 0x1d4   :  { %v1339_v11 = vmul.f32 -1.442695, %v1841_v9 }
 0x1d6   :  { %1574 = vpow2.f32 %v1339_v11 }
 0x1e0   :  { %v1575_v12 = vpop.eup %1574 }
 0x1e1   :  { %v237_v13 = vadd.f32 1.0, %v1575_v12 }
 0x1e3   :  { %1576 = vrcp.f32 %v237_v13 }
 0x1ed   :  { %v1577_v17 = vpop.eup %1576 }
 0x1ee   :  { %v246_v19 = vmul.f32 %v1577_v17, %v1850_v16  ;;  %v249_v46 = vsub.f32 1.0, %v1577_v17  ;;  %v255_v48 = vmul.f32 0.0, %v1577_v17 }
 0x1f0   :  { %v247_v20 = vadd.f32 %v246_v19, %v1853_v18  ;;  %v36_v19 = vld [vmem:[%s2201_s1 + $0x8] sm:$0xff] }
 0x1f2   :  { %1578 = vtanh.f32 %v247_v20 }
 0x1fc   :  { %v1579_v40 = vpop.eup %1578 }
 0x1fd   :  { %251 = vrot.lane.b32.xlu1 %v1579_v40, %s1657_s14 }
 0x26f   :  { %v252_v47 = vpop.permute.xlu1 %251 }
 0x270   :  { %v254_v49 = vmul.f32 %v252_v47, %v249_v46 }
 0x272   :  { %v1940_v50 = vadd.f32 %v255_v48, %v254_v49 }
 0x274   :  { %258 = vrot.lane.b32.xlu0 %v1940_v50, %s1657_s14  ;;  %v356_v62 = vrot.slane %v1940_v50, 6 }
 0x2e6   :  { %v1944_v51 = vpop.permute.xlu0 %258 }
 0x2e7   :  { %1341 = vmatmul.mubr.msk.f32.vlgmr.msra.gmra.mrb[0].mxu1 %vm143_vm2, %v1944_v51 }
 0x2e8   :  { %1439 = vmatpush1.bf16.msra.mxu1 %v1877_v28  ;;  %430 = vmatprep.mubr.f32.mxu1 %v1656_v4 }
 0x2e9   :  { %1441 = vmatprep.subr.bf16.mxu1 %v1879_v29 }
 0x2ec   :  { %1443 = vmatpush1.bf16.msra.mxu1 %v1896_v34 }
 0x2ed   :  { %1445 = vmatprep.subr.bf16.mxu1 %v1900_v35 }
 0x2f0   :  { %1447 = vmatpush1.bf16.msra.mxu1 %v1916_v41 }
 0x2f1   :  { %1449 = vmatprep.subr.bf16.mxu1 %v1921_v42 }
 0x2f4   :  { %1451 = vmatpush1.bf16.msra.mxu1 %v1931_v45 }
 0x2f5   :  { %1469 = vmatprep.subr.bf16.mxu1 %v1866_v24 }
 0x3ba   :  { %v328_v52 = vpop.f32.mrb[0].mxu1 }
 0x3bb   :  { %v334_v53 = vrot.slane %v328_v52, 6  ;;  %v330_v55 = vpop.f32.mrb[1].mxu1 }
 0x3bc   :  { %v337_v60 = vadd.f32 %v1850_v16, %v330_v55 }
 0x3bd   :  { %v336_v56 = vadd.f32 %v334_v53, %v1841_v9 }
 0x3be   :  { %v345_v61 = vrot.slane %v337_v60, 6 }
 0x3bf   :  { %v1342_v57 = vmul.f32 -1.442695, %v336_v56 }
 0x3c1   :  { %1580 = vpow2.f32 %v1342_v57 }
 0x3cb   :  { %v1581_v58 = vpop.eup %1580 }
 0x3cc   :  { %v341_v59 = vadd.f32 1.0, %v1581_v58 }
 0x3ce   :  { %1582 = vrcp.f32 %v341_v59 }
 0x3d8   :  { %v1583_v63 = vpop.eup %1582 }
 0x3d9   :  { %v347_v0 = vmul.f32 %v1583_v63, %v345_v61  ;;  %v358_v5 = vmul.f32 %v1583_v63, %v356_v62  ;;  %v350_v11 = vsub.f32 1.0, %v1583_v63 }
 0x3db   :  { %v348_v6 = vadd.f32 %v347_v0, %v1853_v18 }
 0x3dd   :  { %1584 = vtanh.f32 %v348_v6 }
 0x3e7   :  { %v1585_v8 = vpop.eup %1584 }
 0x3e8   :  { %352 = vrot.lane.b32.xlu1 %v1585_v8, %s1657_s14 }
 0x3ec   :  { %117 = vperm.xlu1 %1562, %v34_v10  }
 0x3f0   :  { %1564 = vset.pattern.permute.xlu1 %v1655_v2 }
 0x45a   :  { %v353_v12 = vpop.permute.xlu1 %352 }
 0x45b   :  { %v355_v13 = vmul.f32 %v353_v12, %v350_v11 }
 0x45d   :  { %v1966_v14 = vadd.f32 %v358_v5, %v355_v13 }
 0x45f   :  { %v361_v17 = vrot.slane %v1966_v14, 2  ;;  %v460_v46 = vrot.slane %v1966_v14, 6 }
 0x461   :  { %362 = vrot.lane.b32.xlu0 %v361_v17, %s1657_s14 }
 0x465   :  { %130 = vperm.xlu0 %1560, %v36_v19  }
 0x469   :  { %1563 = vset.pattern.permute.xlu0 %v1655_v2 }
 0x46a   :  { %93 = vperm.xlu0 %1563, %v34_v10  }
 0x46b   :  { %v118_v37 = vpop.permute.xlu1 %117 }
 0x46c   :  { %vm120_vm3 = vcmp.eq.s32.totalorder %v118_v37, %v1823_v54 }
 0x46d   :  { %v1338_v39 = vsel %vm120_vm3, 1.0, %v1656_v4  ;;  %vm1205_vm3 = vcmask 48128  }
 0x46e   :  { %1565 = vset.pattern.permute.xlu0 %v1654_v1 }
 0x4d3   :  { %v363_v20 = vpop.permute.xlu0 %362 }
 0x4d4   :  { %1343 = vmatmul.mubr.msk.f32.vlgmr.msra.gmra.mrb[2].mxu1 %vm143_vm2, %v363_v20 }
 0x4d5   :  { %1471 = vmatpush1.bf16.msra.mxu1 %v1877_v28  ;;  %638 = vmatprep.mubr.f32.mxu1 %v1656_v4 }
 0x4d6   :  { %1473 = vmatprep.subr.bf16.mxu1 %v1879_v29 }
 0x4d9   :  { %1475 = vmatpush1.bf16.msra.mxu1 %v1896_v34 }
 0x4da   :  { %1477 = vmatprep.subr.bf16.mxu1 %v1900_v35 }
 0x4dd   :  { %1479 = vmatpush1.bf16.msra.mxu1 %v1916_v41 }
 0x4de   :  { %1481 = vmatprep.subr.bf16.mxu1 %v1921_v42 }
 0x4e1   :  { %1483 = vmatpush1.bf16.msra.mxu1 %v1931_v45 }
 0x4e2   :  { %1501 = vmatprep.subr.bf16.mxu1 %v1866_v24 }
 0x4e4   :  { %v131_v40 = vpop.permute.xlu0 %130 }
 0x4e5   :  { %v134_v43 = vmul.f32 %v1338_v39, %v131_v40 }
 0x4e9   :  { %v94_v55 = vpop.permute.xlu0 %93 }
 0x4ea   :  { %vm96_vm4 = vcmp.eq.s32.totalorder %v94_v55, %v1823_v54 }
 0x4eb   :  { %v1336_v56 = vsel %vm96_vm4, 1.0, %v1656_v4  ;;  %vm1207_vm4 = vcmask 56320  }
 0x5a7   :  { %v432_v1 = vpop.f32.mrb[2].mxu1 }
 0x5a8   :  { %v438_v21 = vrot.slane %v432_v1, 4  ;;  %v434_v22 = vpop.f32.mrb[3].mxu1 }
 0x5a9   :  { %v441_v30 = vadd.f32 %v1850_v16, %v434_v22 }
 0x5aa   :  { %v440_v23 = vadd.f32 %v438_v21, %v1841_v9 }
 0x5ab   :  { %v449_v31 = vrot.slane %v441_v30, 4 }
 0x5ac   :  { %v1344_v25 = vmul.f32 -1.442695, %v440_v23 }
 0x5ae   :  { %1586 = vpow2.f32 %v1344_v25 }
 0x5b8   :  { %v1587_v26 = vpop.eup %1586 }
 0x5b9   :  { %v445_v27 = vadd.f32 1.0, %v1587_v26 }
 0x5bb   :  { %1588 = vrcp.f32 %v445_v27 }
 0x5c5   :  { %v1589_v32 = vpop.eup %1588 }
 0x5c6   :  { %v451_v33 = vmul.f32 %v1589_v32, %v449_v31  ;;  %v454_v44 = vsub.f32 1.0, %v1589_v32  ;;  %v462_v48 = vmul.f32 %v1589_v32, %v460_v46 }
 0x5c8   :  { %v452_v36 = vadd.f32 %v451_v33, %v1853_v18 }
 0x5ca   :  { %1590 = vtanh.f32 %v452_v36 }
 0x5d4   :  { %v1591_v38 = vpop.eup %1590 }
 0x5d5   :  { %456 = vrot.lane.b32.xlu1 %v1591_v38, %s1657_s14 }
 0x5d9   :  { %108 = vperm.xlu1 %1564, %v36_v19  }
 0x5dd   :  { %139 = vrot.lane.b32.xlu1 %v134_v43, %s1657_s14 }
 0x647   :  { %v457_v47 = vpop.permute.xlu1 %456 }
 0x648   :  { %v459_v49 = vmul.f32 %v457_v47, %v454_v44 }
 0x64a   :  { %v1995_v52 = vadd.f32 %v462_v48, %v459_v49 }
 0x64c   :  { %v465_v53 = vrot.slane %v1995_v52, 4  ;;  %v564_v21 = vrot.slane %v1995_v52, 6 }
 0x64e   :  { %466 = vrot.lane.b32.xlu0 %v465_v53, %s1657_s14 }
 0x658   :  { %v109_v57 = vpop.permute.xlu1 %108 }
 0x659   :  { %v112_v58 = vmul.f32 %v1336_v56, %v109_v57 }
 0x65c   :  { %v140_v59 = vpop.permute.xlu1 %139 }
 0x65d   :  { %v145_v60 = vsel %vm143_vm2, %v112_v58, %v140_v59 }
 0x65e   :  { %228 = vmatmul.mubr.f32.gmra.mrb[2].mxu0 %v145_v60 }
 0x65f   :  { %534 = vmatprep.mubr.f32.mxu0 %v1656_v4 }
 0x6c0   :  { %v467_v61 = vpop.permute.xlu0 %466 }
 0x6c1   :  { %1345 = vmatmul.mubr.msk.f32.vlgmr.msra.gmra.mrb[4].mxu0 %vm143_vm2, %v467_v61 }
 0x6c2   :  { %1487 = vmatpush1.bf16.msra.mxu0 %v1877_v28  ;;  %734 = vmatprep.mubr.f32.mxu0 %v1656_v4 }
 0x6c3   :  { %1489 = vmatprep.subr.bf16.mxu0 %v1879_v29 }
 0x6c6   :  { %1491 = vmatpush1.bf16.msra.mxu0 %v1896_v34 }
 0x6c7   :  { %1493 = vmatprep.subr.bf16.mxu0 %v1900_v35 }
 0x6ca   :  { %1495 = vmatpush1.bf16.msra.mxu0 %v1916_v41 }
 0x6cb   :  { %1497 = vmatprep.subr.bf16.mxu0 %v1921_v42 }
 0x6ce   :  { %1499 = vmatpush1.bf16.msra.mxu0 %v1931_v45 }
 0x6cf   :  { %1517 = vmatprep.subr.bf16.mxu0 %v1866_v24 }
 0x731   :  { %v229_v54 = vpop.f32.mrb[2].mxu0 }
 0x732   :  { %v231_v62 = vpop.f32.mrb[3].mxu0 }
 0x733   :  { %v2040_v40 = vadd.f32 %v231_v62, %v1845_v15 }
 0x794   :  { %v536_v63 = vpop.f32.mrb[4].mxu0 }
 0x795   :  { %v542_v0 = vrot.slane %v536_v63, 2  ;;  %v538_v5 = vpop.f32.mrb[5].mxu0 }
 0x796   :  { %v545_v12 = vadd.f32 %v1850_v16, %v538_v5 }
 0x797   :  { %v544_v6 = vadd.f32 %v542_v0, %v1841_v9 }
 0x798   :  { %v553_v13 = vrot.slane %v545_v12, 2 }
 0x799   :  { %v1346_v8 = vmul.f32 -1.442695, %v544_v6 }
 0x79b   :  { %1592 = vpow2.f32 %v1346_v8 }
 0x7a5   :  { %v1593_v10 = vpop.eup %1592 }
 0x7a6   :  { %v549_v11 = vadd.f32 1.0, %v1593_v10 }
 0x7a8   :  { %1594 = vrcp.f32 %v549_v11 }
 0x7b2   :  { %v1595_v17 = vpop.eup %1594 }
 0x7b3   :  { %v555_v19 = vmul.f32 %v1595_v17, %v553_v13  ;;  %v558_v1 = vsub.f32 1.0, %v1595_v17  ;;  %v566_v22 = vmul.f32 %v1595_v17, %v564_v21 }
 0x7b5   :  { %v556_v20 = vadd.f32 %v555_v19, %v1853_v18  ;;  %v2035_v18 = vadd.f32 %v229_v54, %v1838_v7 }
 0x7b7   :  { %1596 = vtanh.f32 %v556_v20 }
 0x7c1   :  { %v1597_v24 = vpop.eup %1596 }
 0x7c2   :  { %560 = vrot.lane.b32.xlu1 %v1597_v24, %s1657_s14 }
 0x834   :  { %v561_v9 = vpop.permute.xlu1 %560 }
 0x835   :  { %v563_v23 = vmul.f32 %v561_v9, %v558_v1 }
 0x837   :  { %v2018_v25 = vadd.f32 %v566_v22, %v563_v23 }
 0x839   :  { %v569_v26 = vrot.slane %v2018_v25, 6 }
 0x83b   :  { %570 = vrot.lane.b32.xlu0 %v569_v26, %s1657_s14 }
 0x8ad   :  { %v2022_v27 = vpop.permute.xlu0 %570 }
 0x8ae   :  { %1347 = vmatmul.mubr.msk.f32.vlgmr.msra.gmra.mrb[4].mxu1 %vm143_vm2, %v2022_v27 }
 0x8af   :  { %1503 = vmatpush1.bf16.msra.mxu1 %v1877_v28  ;;  %838 = vmatprep.mubr.f32.mxu1 %v1656_v4 }
 0x8b0   :  { %1505 = vmatprep.subr.bf16.mxu1 %v1879_v29 }
 0x8b3   :  { %1507 = vmatpush1.bf16.msra.mxu1 %v1896_v34 }
 0x8b4   :  { %1509 = vmatprep.subr.bf16.mxu1 %v1900_v35 }
 0x8b7   :  { %1511 = vmatpush1.bf16.msra.mxu1 %v1916_v41 }
 0x8b8   :  { %1513 = vmatprep.subr.bf16.mxu1 %v1921_v42 }
 0x8bb   :  { %1515 = vmatpush1.bf16.msra.mxu1 %v1931_v45 }
 0x981   :  { %v640_v30 = vpop.f32.mrb[4].mxu1 }
 0x982   :  { %v645_v31 = vadd.f32 %v640_v30, %v2035_v18  ;;  %v642_v32 = vpop.f32.mrb[5].mxu1 }
 0x983   :  { %v646_v38 = vadd.f32 %v1850_v16, %v642_v32 }
 0x984   :  { %v1348_v33 = vmul.f32 -1.442695, %v645_v31 }
 0x986   :  { %1598 = vpow2.f32 %v1348_v33 }
 0x990   :  { %v1599_v36 = vpop.eup %1598 }
 0x991   :  { %v650_v37 = vadd.f32 1.0, %v1599_v36 }
 0x993   :  { %1600 = vrcp.f32 %v650_v37 }
 0x99d   :  { %v1601_v39 = vpop.eup %1600 }
 0x99e   :  { %v653_v43 = vmul.f32 %v1601_v39, %v646_v38  ;;  %v656_v47 = vsub.f32 1.0, %v1601_v39  ;;  %v663_v49 = vmul.f32 %v1601_v39, %v569_v26  ;;  %v1013_v39 = vrot.slane %v1995_v52, 2 }
 0x9a0   :  { %v654_v44 = vadd.f32 %v653_v43, %v2040_v40 }
 0x9a2   :  { %1602 = vtanh.f32 %v654_v44 }
 0x9ac   :  { %v1603_v7 = vpop.eup %1602 }
 0x9ad   :  { %658 = vrot.lane.b32.xlu1 %v1603_v7, %s1657_s14 }
 0xa1f   :  { %v659_v48 = vpop.permute.xlu1 %658 }
 0xa20   :  { %v661_v53 = vmul.f32 %v659_v48, %v656_v47 }
 0xa22   :  { %v2044_v55 = vadd.f32 %v663_v49, %v661_v53 }
 0xa24   :  { %666 = vrot.lane.b32.xlu0 %v2044_v55, %s1657_s14  ;;  %v1002_v43 = vrot.slane %v2044_v55, 2 }
 0xa96   :  { %v2048_v56 = vpop.permute.xlu0 %666 }
 0xa97   :  { %1349 = vmatmul.mubr.msk.f32.vlgmr.msra.gmra.mrb[6].mxu0 %vm143_vm2, %v2048_v56 }
 0xa98   :  { %1519 = vmatpush1.bf16.msra.mxu0 %v1877_v28  ;;  %942 = vmatprep.mubr.f32.mxu0 %v1656_v4 }
 0xa99   :  { %1521 = vmatprep.subr.bf16.mxu0 %v1879_v29 }
 0xa9c   :  { %1523 = vmatpush1.bf16.msra.mxu0 %v1896_v34 }
 0xa9d   :  { %1525 = vmatprep.subr.bf16.mxu0 %v1900_v35  ;;  %v764_v35 = vrot.slane %v2044_v55, 6 }
 0xaa0   :  { %1527 = vmatpush1.bf16.msra.mxu0 %v1916_v41 }
 0xaa1   :  { %1529 = vmatprep.subr.bf16.mxu0 %v1921_v42 }
 0xaa4   :  { %1531 = vmatpush1.bf16.msra.mxu0 %v1931_v45 }
 0xb6a   :  { %v736_v15 = vpop.f32.mrb[6].mxu0 }
 0xb6b   :  { %v742_v57 = vrot.slane %v736_v15, 6  ;;  %v738_v58 = vpop.f32.mrb[7].mxu0 }
 0xb6c   :  { %v745_v29 = vadd.f32 %v1850_v16, %v738_v58 }
 0xb6d   :  { %v744_v59 = vadd.f32 %v742_v57, %v2035_v18 }
 0xb6e   :  { %v753_v34 = vrot.slane %v745_v29, 6 }
 0xb6f   :  { %v1350_v28 = vmul.f32 -1.442695, %v744_v59 }
 0xb71   :  { %1604 = vpow2.f32 %v1350_v28 }
 0xb7b   :  { %v1605_v4 = vpop.eup %1604 }
 0xb7c   :  { %v749_v60 = vadd.f32 1.0, %v1605_v4 }
 0xb7e   :  { %1606 = vrcp.f32 %v749_v60 }
 0xb88   :  { %v1607_v41 = vpop.eup %1606 }
 0xb89   :  { %v755_v61 = vmul.f32 %v1607_v41, %v753_v34  ;;  %v766_v42 = vmul.f32 %v1607_v41, %v764_v35  ;;  %v758_v62 = vsub.f32 1.0, %v1607_v41  ;;  %v1047_v34 = vld [vmem:[%s2206_s6 + $0x28] sm:$0xff]  ;;  %v1048_v41 = vld [vmem:[%s2206_s6 + $0x30] sm:$0xff] }
 0xb8b   :  { %v756_v45 = vadd.f32 %v755_v61, %v2040_v40 }
 0xb8d   :  { %1608 = vtanh.f32 %v756_v45 }
 0xb97   :  { %v1609_v54 = vpop.eup %1608 }
 0xb98   :  { %760 = vrot.lane.b32.xlu1 %v1609_v54, %s1657_s14 }
 0xc0a   :  { %v761_v63 = vpop.permute.xlu1 %760 }
 0xc0b   :  { %v763_v0 = vmul.f32 %v761_v63, %v758_v62 }
 0xc0d   :  { %v2065_v5 = vadd.f32 %v766_v42, %v763_v0 }
 0xc0f   :  { %v769_v6 = vrot.slane %v2065_v5, 2  ;;  %v868_v30 = vrot.slane %v2065_v5, 6 }
 0xc11   :  { %770 = vrot.lane.b32.xlu0 %v769_v6, %s1657_s14  ;;  %v1028_v6 = vrot.slane %v1940_v50, 2 }
 0xc83   :  { %v771_v8 = vpop.permute.xlu0 %770 }
 0xc84   :  { %1351 = vmatmul.mubr.msk.f32.vlgmr.msra.gmra.mrb[6].mxu1 %vm143_vm2, %v771_v8 }
 0xd57   :  { %v840_v10 = vpop.f32.mrb[6].mxu1 }
 0xd58   :  { %v846_v11 = vrot.slane %v840_v10, 4  ;;  %v842_v12 = vpop.f32.mrb[7].mxu1 }
 0xd59   :  { %v849_v24 = vadd.f32 %v1850_v16, %v842_v12 }
 0xd5a   :  { %v848_v13 = vadd.f32 %v846_v11, %v2035_v18 }
 0xd5b   :  { %v857_v1 = vrot.slane %v849_v24, 4 }
 0xd5c   :  { %v1352_v17 = vmul.f32 -1.442695, %v848_v13 }
 0xd5e   :  { %1610 = vpow2.f32 %v1352_v17 }
 0xd68   :  { %v1611_v19 = vpop.eup %1610 }
 0xd69   :  { %v853_v20 = vadd.f32 1.0, %v1611_v19 }
 0xd6b   :  { %1612 = vrcp.f32 %v853_v20 }
 0xd75   :  { %v1613_v21 = vpop.eup %1612 }
 0xd76   :  { %v859_v9 = vmul.f32 %v1613_v21, %v857_v1  ;;  %v862_v26 = vsub.f32 1.0, %v1613_v21  ;;  %v870_v32 = vmul.f32 %v1613_v21, %v868_v30 }
 0xd78   :  { %v860_v22 = vadd.f32 %v859_v9, %v2040_v40 }
 0xd7a   :  { %1614 = vtanh.f32 %v860_v22 }
 0xd84   :  { %v1615_v23 = vpop.eup %1614 }
 0xd85   :  { %864 = vrot.lane.b32.xlu1 %v1615_v23, %s1657_s14 }
 0xdf7   :  { %v865_v31 = vpop.permute.xlu1 %864 }
 0xdf8   :  { %v867_v33 = vmul.f32 %v865_v31, %v862_v26  ;;  %v2148_v31 = vsel %vm982_vm5, %v2048_v56, %v2022_v27  ;;  %v1355_v56 = vld [vmem:[%s2207_s7] ss:$0 sm:$0xff]  ;;  %s1665_s7 = smov [#allocation2]  }
 0xdfa   :  { %v871_v36 = vadd.f32 %v870_v32, %v867_v33 }
 0xdfc   :  { %v873_v37 = vrot.slane %v871_v36, 4  ;;  %v987_v38 = vrot.slane %v871_v36, 2  ;;  %v972_v45 = vrot.slane %v871_v36, 6 }
 0xdfe   :  { %874 = vrot.lane.b32.xlu0 %v873_v37, %s1657_s14 }
 0xe02   :  { %988 = vrot.lane.b32.xlu0 %v987_v38, %s1657_s14 }
 0xe06   :  { %995 = vrot.lane.b32.xlu0 %v868_v30, %s1657_s14 }
 0xe0a   :  { %1014 = vrot.lane.b32.xlu0 %v1013_v39, %s1657_s14 }
 0xe0e   :  { %1003 = vrot.lane.b32.xlu0 %v1002_v43, %s1657_s14 }
 0xe12   :  { %1021 = vrot.lane.b32.xlu0 %v460_v46, %s1657_s14 }
 0xe70   :  { %v875_v44 = vpop.permute.xlu0 %874 }
 0xe71   :  { %1353 = vmatmul.mubr.msk.f32.vlgmr.msra.gmra.mrb[8].mxu0 %vm143_vm2, %v875_v44 }
 0xe74   :  { %v989_v8 = vpop.permute.xlu0 %988 }
 0xe78   :  { %v996_v11 = vpop.permute.xlu0 %995 }
 0xe7c   :  { %v1015_v13 = vpop.permute.xlu0 %1014 }
 0xe80   :  { %v1004_v19 = vpop.permute.xlu0 %1003 }
 0xe84   :  { %v1022_v24 = vpop.permute.xlu0 %1021 }
 0xf44   :  { %v944_v7 = vpop.f32.mrb[8].mxu0 }
 0xf45   :  { %v950_v47 = vrot.slane %v944_v7, 2  ;;  %v946_v48 = vpop.f32.mrb[9].mxu0 }
 0xf46   :  { %v953_v55 = vadd.f32 %v1850_v16, %v946_v48  ;;  %v1043_v16 = vld [vmem:[%s2206_s6 + $0x8] sm:$0xff] }
 0xf47   :  { %v952_v49 = vadd.f32 %v950_v47, %v2035_v18  ;;  %v1042_v18 = vld [vmem:[%s2206_s6] sm:$0xff] }
 0xf48   :  { %v961_v58 = vrot.slane %v953_v55, 2  ;;  %v1532_v60 = vpack.c.bf16 %v1043_v16, %v1042_v18 }
 0xf49   :  { %v1354_v53 = vmul.f32 -1.442695, %v952_v49  ;;  %v1358_v49 = vld [vmem:[%s2208_s8] ss:$0 sm:$0xff]  ;;  %s1327_s8 = sshll.u32 %s1665_s7, 4  ;;  %s1328_s8 = int_to_ptr.vmem [resolvable:$true] %s1327_s8 }
 0xf4a   :  { %1533 = vmatprep.subr.bf16.mxu1 %v1532_v60  ;;  %p1635_p1 = scmp.lt.s32.totalorder %s1328_s8, %s1328_s8 }
 0xf4b   :  { %1616 = vpow2.f32 %v1354_v53  ;;  %1535 = vmatpush3.bf16.msra.mxu1 %v1532_v60 }
 0xf55   :  { %v1617_v15 = vpop.eup %1616 }
 0xf56   :  { %v957_v57 = vadd.f32 1.0, %v1617_v15 }
 0xf58   :  { %1618 = vrcp.f32 %v957_v57 }
 0xf62   :  { %v1619_v59 = vpop.eup %1618 }
 0xf63   :  { %v963_v28 = vmul.f32 %v1619_v59, %v961_v58  ;;  %v966_v42 = vsub.f32 1.0, %v1619_v59  ;;  %v974_v62 = vmul.f32 %v1619_v59, %v972_v45 }
 0xf65   :  { %v964_v46 = vadd.f32 %v963_v28, %v2040_v40  ;;  %v1044_v40 = vld [vmem:[%s2206_s6 + $0x10] sm:$0xff] }
 0xf67   :  { %1620 = vtanh.f32 %v964_v46 }
 0xf71   :  { %v1621_v4 = vpop.eup %1620 }
 0xf72   :  { %968 = vrot.lane.b32.xlu1 %v1621_v4, %s1657_s14 }
 0xf76   :  { %984 = vrot.lane.b32.xlu1 %v1966_v14, %s1657_s14  ;;  %v1045_v14 = vld [vmem:[%s2206_s6 + $0x18] sm:$0xff] }
 0xf77   :  { %v1536_v29 = vpack.c.bf16 %v1045_v14, %v1044_v40 }
 0xf79   :  { %1537 = vmatprep.subr.bf16.mxu1 %v1536_v29 }
 0xf7a   :  { %992 = vrot.lane.b32.xlu1 %v1995_v52, %s1657_s14  ;;  %1539 = vmatpush3.bf16.msra.mxu1 %v1536_v29  ;;  %v1046_v52 = vld [vmem:[%s2206_s6 + $0x20] sm:$0xff] }
 0xf7b   :  { %v1540_v35 = vpack.c.bf16 %v1047_v34, %v1046_v52 }
 0xf7d   :  { %1541 = vmatprep.subr.bf16.mxu1 %v1540_v35 }
 0xf7e   :  { %1010 = vrot.lane.b32.xlu1 %v2065_v5, %s1657_s14  ;;  %1543 = vmatpush3.bf16.msra.mxu1 %v1540_v35 }
 0xf82   :  { %999 = vrot.lane.b32.xlu1 %v2018_v25, %s1657_s14  ;;  %v1049_v25 = vld [vmem:[%s2206_s6 + $0x38] sm:$0xff] }
 0xf83   :  { %v1544_v61 = vpack.c.bf16 %v1049_v25, %v1048_v41 }
 0xf85   :  { %1545 = vmatprep.subr.bf16.mxu1 %v1544_v61 }
 0xf86   :  { %1018 = vrot.lane.b32.xlu1 %v871_v36, %s1657_s14  ;;  %1547 = vmatpush3.bf16.msra.mxu1 %v1544_v61 }
 0xfe4   :  { %v969_v54 = vpop.permute.xlu1 %968 }
 0xfe5   :  { %v971_v63 = vmul.f32 %v969_v54, %v966_v42 }
 0xfe7   :  { %v975_v0 = vadd.f32 %v974_v62, %v971_v63 }
 0xfe8   :  { %v985_v10 = vpop.permute.xlu1 %984 }
 0xfe9   :  { %1025 = vrot.lane.b32.xlu1 %v975_v0, %s1657_s14  ;;  %v978_v5 = vrot.slane %v975_v0, 6  ;;  %v2128_v9 = vsel %vm982_vm5, %v985_v10, %v989_v8 }
 0xfeb   :  { %979 = vrot.lane.b32.xlu0 %v978_v5, %s1657_s14 }
 0xfec   :  { %v993_v12 = vpop.permute.xlu1 %992 }
 0xfed   :  { %v2138_v23 = vsel %vm982_vm5, %v993_v12, %v996_v11 }
 0xfef   :  { %1029 = vrot.lane.b32.xlu0 %v1028_v6, %s1657_s14 }
 0xff0   :  { %v1011_v17 = vpop.permute.xlu1 %1010 }
 0xff1   :  { %v2131_v50 = vsel %vm982_vm5, %v1011_v17, %v1015_v13 }
 0xff2   :  { %v1039_v33 = vsel %vm1033_vm6, %v2148_v31, %v2131_v50 }
 0xff4   :  { %v1000_v20 = vpop.permute.xlu1 %999 }
 0xff5   :  { %v2151_v32 = vsel %vm982_vm5, %v1000_v20, %v1004_v19 }
 0xff8   :  { %v1019_v1 = vpop.permute.xlu1 %1018 }
 0xff9   :  { %v2141_v26 = vsel %vm982_vm5, %v1019_v1, %v1022_v24 }
 0xffa   :  { %v1040_v39 = vsel %vm1035_vm8, %v1039_v33, %v2141_v26 }
0x105b   :  { %v1026_v36 = vpop.permute.xlu1 %1025 }
0x105d   :  { %v980_v21 = vpop.permute.xlu0 %979 }
0x105e   :  { %v2135_v22 = vsel %vm982_vm5, %v1944_v51, %v980_v21  ;;  %v1658_v21 = vmov 3  }
0x105f   :  { %v1034_v30 = vsel %vm1033_vm6, %v2135_v22, %v2128_v9  ;;  %1566 = vset.pattern.permute.xlu1 %v1658_v21 }
0x1060   :  { %v1036_v51 = vsel %vm1035_vm8, %v1034_v30, %v2138_v23 }
0x1061   :  { %v1030_v37 = vpop.permute.xlu0 %1029  ;;  %v1038_v38 = vsel %vm1037_vm7, %v1036_v51, %v2151_v32 }
0x1062   :  { %v2159_v43 = vsel %vm982_vm5, %v1026_v36, %v1030_v37  ;;  %1385 = vmatprep.mubr.msk.f32.mxu1 %vm143_vm2, %v1038_v38  ;;  %vm1209_vm5 = vcmask 58368   ;;  %v1659_v36 = vmov 5   ;;  %v1660_v37 = vmov 7  }
0x1063   :  { %v1041_v27 = vsel %vm1037_vm7, %v1040_v39, %v2159_v43  ;;  %v1661_v38 = vmov 2   ;;  %v1662_v39 = vmov 6  }
0x1064   :  { %1386 = vmatmul.mubr.msk.f32.vlgmr.msra.gmra.mrb[8].mxu1 %vm143_vm2, %v1041_v27  ;;  %v1663_v27 = vmov 4  }
0x1137   :  { %v1387_v44 = vpop.f32.mrb[8].mxu1 }
0x1138   :  { %v1135_v7 = vadd.f32 %v1387_v44, %v1355_v56  ;;  %v1129_v47 = vpop.f32.mrb[9].mxu1 }
0x1139   :  { %v1130_v48 = vadd.f32 %v1355_v56, %v1129_v47 }
0x113a   :  { %1622 = vtanh.f32 %v1135_v7 }
0x113b   :  { %1624 = vtanh.f32 %v1130_v48 }
0x1144   :  { %v1623_v53 = vpop.eup %1622 }
0x1145   :  { %v1625_v15 = vpop.eup %1624  ;;  %v1164_v57 = vmul.f32 %v1623_v53, %v1358_v49 }
0x1146   :  { %v1147_v59 = vmul.f32 %v1625_v15, %v1358_v49 }
0x1147   :  { %v1168_v55 = vsel %vm1152_vm9, %v1164_v57, 0.0  ;;  %v1165_v58 = vsel %vm1148_vm10, %v1164_v57, 0.0  ;;  %v1174_v16 = vsel %vm1160_vm12, %v1164_v57, 0.0  ;;  %v1171_v40 = vsel %vm1156_vm11, %v1164_v57, 0.0 }
0x1148   :  { %1169 = vadd.xlane.f32.xlu0 %v1168_v55  ;;  %1166 = vadd.xlane.f32.xlu1 %v1165_v58  ;;  %v1157_v28 = vsel %vm1156_vm11, %v1147_v59, 0.0  ;;  %v1153_v46 = vsel %vm1152_vm9, %v1147_v59, 0.0  ;;  %v1161_v4 = vsel %vm1160_vm12, %v1147_v59, 0.0  ;;  %v1149_v18 = vsel %vm1148_vm10, %v1147_v59, 0.0 }
0x114c   :  { %1158 = vadd.xlane.f32.xlu0 %v1157_v28  ;;  %1154 = vadd.xlane.f32.xlu1 %v1153_v46 }
0x1150   :  { %1162 = vadd.xlane.f32.xlu1 %v1161_v4  ;;  %1150 = vadd.xlane.f32.xlu0 %v1149_v18 }
0x1154   :  { %1175 = vadd.xlane.f32.xlu1 %v1174_v16  ;;  %1172 = vadd.xlane.f32.xlu0 %v1171_v40 }
0x11d5   :  { %v1170_v60 = vpop.xlane.xlu0 %1169  ;;  %v1167_v14 = vpop.xlane.xlu1 %1166 }
0x11d6   :  { %v1187_v54 = vrot.slane %v1170_v60, 2 }
0x11d9   :  { %v1159_v29 = vpop.xlane.xlu0 %1158  ;;  %v1155_v52 = vpop.xlane.xlu1 %1154 }
0x11da   :  { %v1178_v34 = vrot.slane %v1155_v52, 2  ;;  %v1181_v35 = vrot.slane %v1159_v29, 4 }
0x11dd   :  { %v1163_v41 = vpop.xlane.xlu1 %1162  ;;  %v1151_v25 = vpop.xlane.xlu0 %1150 }
0x11de   :  { %v1184_v61 = vrot.slane %v1163_v41, 6  ;;  %v1196_v42 = vsel %vm1195_vm13, %v1151_v25, %v1178_v34 }
0x11df   :  { %v1198_v45 = vsel %vm1197_vm14, %v1196_v42, %v1181_v35 }
0x11e0   :  { %v1200_v62 = vsel %vm1199_vm15, %v1198_v45, %v1184_v61 }
0x11e1   :  { %v1176_v63 = vpop.xlane.xlu1 %1175  ;;  %v1173_v0 = vpop.xlane.xlu0 %1172  ;;  %v1202_v5 = vsel %vm1201_vm0, %v1200_v62, %v1167_v14 }
0x11e2   :  { %v1193_v6 = vrot.slane %v1176_v63, 6  ;;  %v1190_v8 = vrot.slane %v1173_v0, 4  ;;  %v1204_v10 = vsel %vm1203_vm1, %v1202_v5, %v1187_v54 }
0x11e4   :  { %v1206_v11 = vsel %vm1205_vm3, %v1204_v10, %v1190_v8 }
0x11e5   :  { %v1208_v12 = vsel %vm1207_vm4, %v1206_v11, %v1193_v6 }
0x11e6   :  { %v1210_v13 = vsel %vm1209_vm5, %v1208_v12, -inf }
0x11e7   :  { %1211 = vmax.xlane.f32.xlu0 %v1210_v13 }
0x1274   :  { %v1212_v17 = vpop.xlane.xlu0 %1211 }
0x1275   :  { %v1213_v19 = vsub.f32 %v1208_v12, %v1212_v17 }
0x1277   :  { %v1214_v20 = vmul.f32 1.442695, %v1213_v19 }
0x1279   :  { %1626 = vpow2.f32 %v1214_v20 }
0x1283   :  { %v1627_v24 = vpop.eup %1626 }
0x1284   :  { %v1216_v1 = vsel %vm1209_vm5, %v1627_v24, 0.0 }
0x1285   :  { %1217 = vadd.xlane.f32.xlu1 %v1216_v1 }
0x1312   :  { %v1218_v30 = vpop.xlane.xlu1 %1217 }
0x1313   :  { %1628 = vrcp.f32 %v1218_v30 }
0x131d   :  { %v1629_v51 = vpop.eup %1628 }
0x131e   :  { %v1220_v33 = vmul.f32 %v1629_v51, %v1627_v24 }
0x1320   :  { %1240 = vperm.xlu1 %1566, %v1220_v33   ;;  %1228 = vperm.xlu0 %1565, %v1220_v33  }
0x1324   :  { %1567 = vset.pattern.permute.xlu1 %v1659_v36  ;;  %1573 = vset.pattern.permute.xlu0 %v1660_v37 }
0x1325   :  { %1251 = vperm.xlu1 %1567, %v1220_v33  }
0x1329   :  { %1568 = vset.pattern.permute.xlu1 %v1660_v37 }
0x132a   :  { %1263 = vperm.xlu1 %1568, %v1220_v33  }
0x132e   :  { %1569 = vset.pattern.permute.xlu1 %v1661_v38 }
0x132f   :  { %1234 = vperm.xlu1 %1569, %v1220_v33  }
0x1333   :  { %1570 = vset.pattern.permute.xlu1 %v1662_v39 }
0x1334   :  { %1257 = vperm.xlu1 %1570, %v1220_v33  }
0x1338   :  { %1571 = vset.pattern.permute.xlu1 %v1655_v2 }
0x1339   :  { %1223 = vperm.xlu1 %1571, %v1220_v33  }
0x133d   :  { %1572 = vset.pattern.permute.xlu1 %v1663_v27 }
0x133e   :  { %1246 = vperm.xlu1 %1572, %v1220_v33  }
0x139f   :  { %v1241_v56 = vpop.permute.xlu1 %1240  ;;  %v1229_v44 = vpop.permute.xlu0 %1228 }
0x13a0   :  { %v1242_v7 = vrot.slane %v1241_v56, 2  ;;  %v1230_v47 = vrot.slane %v1229_v44, 6 }
0x13a2   :  { %v1244_v48 = vmul.f32 %v1242_v7, %v2151_v32  ;;  %v1232_v49 = vmul.f32 %v1230_v47, %v2128_v9 }
0x13a4   :  { %v1277_v53 = vrot.slane %v1244_v48, 6  ;;  %v1269_v15 = vrot.slane %v1232_v49, 2  ;;  %v1252_v57 = vpop.permute.xlu1 %1251 }
0x13a5   :  { %v1253_v55 = vrot.slane %v1252_v57, 6 }
0x13a6   :  { %1278 = vrot.lane.b32.xlu0 %v1277_v53, %s1657_s14  ;;  %1270 = vrot.lane.b32.xlu1 %v1269_v15, %s1657_s14 }
0x13a7   :  { %v1255_v2 = vmul.f32 %v1253_v55, %v2131_v50  ;;  %v1664_v50 = vmov 1983009808  }
0x13a8   :  { %v1305_v52 = vunpack.c.l.s4 %v1664_v50 }
0x13a9   :  { %v1282_v58 = vrot.slane %v1255_v2, 2  ;;  %v1264_v59 = vpop.permute.xlu1 %1263 }
0x13aa   :  { %v1265_v28 = vrot.slane %v1264_v59, 2  ;;  %v1306_v25 = vunpack.c.0.s8 %v1305_v52 }
0x13ab   :  { %1283 = vrot.lane.b32.xlu1 %v1282_v58, %s1657_s14 }
0x13ac   :  { %v1267_v46 = vmul.f32 %v1265_v28, %v2159_v43  ;;  %v1309_v0 = vsub.s32 %v1306_v25, %v1832_v3 }
0x13ae   :  { %v1290_v32 = vrot.slane %v1267_v46, 6  ;;  %v1235_v9 = vpop.permute.xlu1 %1234 }
0x13af   :  { %v1236_v16 = vrot.slane %v1235_v9, 4 }
0x13b0   :  { %1291 = vrot.lane.b32.xlu0 %v1290_v32, %s1657_s14  ;;  %s1630_s14 = scalar_lea.vmem %s1328_s8, 128 }
0x13b1   :  { %v1238_v60 = vmul.f32 %v1236_v16, %v2138_v23  ;;  %p1631_p0 = scmp.ne.s32.totalorder %s1328_s8, %s1630_s14  ;;  %p1636_p2 = scmp.lt.s32.totalorder %s1630_s14, %s1630_s14 }
0x13b3   :  { %v1258_v4 = vpop.permute.xlu1 %1257  ;;  %v1274_v35 = vrot.slane %v1238_v60, 4  ;;  %p1637_p3 = por %p1636_p2, %p1635_p1 }
0x13b4   :  { %v1259_v14 = vrot.slane %v1258_v4, 4 }
0x13b5   :  { %p1638_p4 = pnand %p1637_p3, %p1631_p0 }
0x13b6   :  { %v1261_v41 = vmul.f32 %v1259_v14, %v2141_v26 }
0x13b8   :  { %v1224_v18 = vpop.permute.xlu1 %1223  ;;  %v1287_v54 = vrot.slane %v1261_v41, 4 }
0x13b9   :  { %v1226_v43 = vmul.f32 %v1224_v18, %v2135_v22 }
0x13bd   :  { %v1247_v40 = vpop.permute.xlu1 %1246 }
0x13be   :  { %v1249_v62 = vmul.f32 %v1247_v40, %v2148_v31 }
0x1418   :  { %v1271_v29 = vpop.permute.xlu1 %1270  ;;  %v1279_v34 = vpop.permute.xlu0 %1278 }
0x1419   :  { %v1294_v61 = vsel %vm143_vm2, %v1226_v43, %v1271_v29  ;;  %v1295_v42 = vsel %vm143_vm2, %v1274_v35, %v1279_v34 }
0x141a   :  { %v1302_v23 = vcombine.low %v1294_v61, %v1295_v42 }
0x141c   :  { %v1310_v22 = vrot.slane %v1302_v23, %v1309_v0 }
0x141d   :  { %v1284_v45 = vpop.permute.xlu1 %1283 }
0x141e   :  { %v1296_v5 = vsel %vm143_vm2, %v1249_v62, %v1284_v45 }
0x1422   :  { %v1292_v63 = vpop.permute.xlu0 %1291 }
0x1423   :  { %v1297_v6 = vsel %vm143_vm2, %v1287_v54, %v1292_v63 }
0x1424   :  { %v1303_v26 = vcombine.low %v1296_v5, %v1297_v6 }
0x1426   :  { %v1317_v8 = vrot.slane %v1303_v26, %v1309_v0 }
0x1428   :  { %v1318_v10 = vcombine.low %v1310_v22, %v1317_v8 }
0x142a   :  { %1320 = vst [vmem:[#allocation2] sm:$0xff] %v1318_v10 }
0x142b   :  { %1641 = shalt.err (!%p1638_p4)
}
0x142c   :  { %s1642_s24 = scalar_lea.hbm %s2209_s9, 128 }
0x142d   :  { %p1643_p5 = scmp.ne.s32.totalorder %s2209_s9, %s1642_s24  ;;  %p1646_p6 = scmp.lt.u32.totalorder %s1642_s24, %s2209_s9 }
0x142f   :  { %p1648_p7 = pnand %p1646_p6, %p1643_p5 }
0x1431   :  { %1651 = shalt.err (!%p1648_p7)
}
0x1432   :  { %1330 = dma.vmem_to_hbm [thread:$0]  %s1328_s8, 128, %s2209_s9, [#allocation3]  }
0x1433   :  { %1652 = dma.done.wait [#allocation3], 128  }
0x1434   :  { %1653 = vsyncadd [#allocation3], 4294967168 }
0x1435   :  { %1334 = vsyncpa [#allocation3], 1 }

</bundles_post_ra>
